<compile_context>
chip_gen: v5e
topology: v5e:2x2
jax: 0.10.0
libtpu: 0.0.40
codegen_flags: <defaults>
</compile_context>

<pallas_src>
import functools

import jax
import jax.numpy as jnp
from jax.experimental import pallas as pl
from jax.experimental.pallas import tpu as pltpu


def _round_up(v, m):
    return (v + m - 1) // m * m


def grn_encoder_kernel(xflat_ref, wbig_ref, bbig_ref, wih_ref, bi_ref,
                       whh_ref, bhn_ref, h_ref, gi_ref, *, T, B, H, HP):
    """Single invocation: time-parallel prepass + serial GRU recurrence.

    xflat_ref : (T*B, N*F)    per-(t,b) node features, flattened over (n, f)
    wbig_ref  : (N*F, NGp)    kron(A_norm^T, W_gcn), cols zero-padded to NGp (mult of 128)
    bbig_ref  : (1, NGp)      tiled GCN bias (zero-padded)
    wih_ref   : (NGp, 3*HP)   GRU W_ih^T, per-gate 128-lane padded, rows padded to NGp
    bi_ref    : (1, 3*HP)     b_ih + [b_hh_r, b_hh_z, 0], per-gate padded
    whh_ref   : (HP, 3*HP)    GRU W_hh^T, per-gate padded cols, rows padded to HP
    bhn_ref   : (1, HP)       n-gate hidden bias (stays inside r * (...)), padded
    h_ref     : (B, H)        output: final hidden state
    gi_ref    : (T*B, 3*HP)   VMEM scratch: precomputed input-side gates (dense slab)
    """
    # ---- time-parallel prepass: GCN (A folded in via kron) + ReLU + GRU input projection ----
    gf = jnp.maximum(
        jnp.dot(xflat_ref[...], wbig_ref[...],
                preferred_element_type=jnp.float32) + bbig_ref[...], 0.0)        # (T*B, NGp)
    gi_ref[...] = jnp.dot(gf, wih_ref[...],
                          preferred_element_type=jnp.float32) + bi_ref[...]      # (T*B, 3*HP)

    # hoisted loop invariants (JAX does not CSE broadcasts inside the loop)
    whh = whh_ref[...]                                   # (HP, 3*HP)
    bhn = jnp.broadcast_to(bhn_ref[...], (B, HP))        # (B, HP)

    # ---- serial GRU recurrence: only h @ W_hh + gate nonlinearities on the critical path ----
    def step(t, h):
        gi = gi_ref[pl.ds(t * B, B), :]                                          # (B, 3*HP)
        gh = jnp.dot(h, whh, preferred_element_type=jnp.float32)                 # (B, 3*HP)
        # Per-gate 128-lane blocks: every slice below is a whole-vreg read.
        r = jax.nn.sigmoid(gi[:, 0:HP] + gh[:, 0:HP])
        z = jax.nn.sigmoid(gi[:, HP:2 * HP] + gh[:, HP:2 * HP])
        n = jnp.tanh(gi[:, 2 * HP:3 * HP] + r * (gh[:, 2 * HP:3 * HP] + bhn))
        return (1.0 - z) * n + z * h

    h = jax.lax.fori_loop(0, T, step, jnp.zeros((B, HP), jnp.float32),
                          unroll=True)    # full unroll is right for small T; use partial unroll for large T
    h_ref[...] = h[:, :H]


def prepare_params(a_norm, wg, bg, wih, whh, bih, bhh):
    """ONE-TIME parameter prep (kron fold, per-gate 128-lane padding, bias folding).

    Cache the result across forwards; nothing here re-runs on the hot path.
    """
    N = a_norm.shape[0]
    F, G = wg.shape
    H = whh.shape[0]
    NG = N * G
    NGp = _round_up(NG, 128)
    HP = _round_up(H, 128)

    # flatten_n,g(A X W)[(t,b), n*G+g] = (Xflat @ kron(A^T, W))[(t,b), n*G+g]
    wbig = jnp.kron(a_norm.T, wg)                                     # (N*F, N*G)
    bbig = jnp.tile(bg.reshape(-1), N)[None, :]                       # (1, N*G)
    wbig_p = jnp.pad(wbig, ((0, 0), (0, NGp - NG)))                   # (N*F, NGp)
    bbig_p = jnp.pad(bbig, ((0, 0), (0, NGp - NG)))                   # (1, NGp)

    # fold r/z hidden biases into the input-side bias; keep the n hidden bias separate
    bi = bih + jnp.concatenate(
        [bhh[:, :2 * H], jnp.zeros((1, H), jnp.float32)], axis=1)     # (1, 3H)
    bhn = bhh[:, 2 * H:3 * H]                                         # (1, H)

    def per_gate_pad(a):                                              # (..., 3H) -> (..., 3*HP)
        parts = [a[..., i * H:(i + 1) * H] for i in range(3)]
        parts = [jnp.pad(p, [(0, 0)] * (a.ndim - 1) + [(0, HP - H)]) for p in parts]
        return jnp.concatenate(parts, axis=-1)

    wih_p = jnp.pad(per_gate_pad(wih), ((0, NGp - NG), (0, 0)))       # (NGp, 3*HP)
    whh_p = jnp.pad(per_gate_pad(whh), ((0, HP - H), (0, 0)))         # (HP, 3*HP)
    bi_p = per_gate_pad(bi)                                           # (1, 3*HP)
    bhn_p = jnp.pad(bhn, ((0, 0), (0, HP - H)))                       # (1, HP)

    return dict(wbig=wbig_p, bbig=bbig_p, wih=wih_p, bi=bi_p,
                whh=whh_p, bhn=bhn_p, H=H, HP=HP)


def grn_encoder_forward(x_btnf, params):
    """x_btnf: (B, T, N, F) (PyTorch layout). Returns final GRU hidden state (1, B, H)."""
    B, T, N, F = x_btnf.shape
    H, HP = params["H"], params["HP"]

    # (B,T)->(T,B) reorder so per-step gi rows are contiguous.
    # TODO(synk): at production sizes fold this relayout into a gridded prepass index_map.
    xflat = jnp.transpose(x_btnf, (1, 0, 2, 3)).reshape(T * B, N * F)

    operands = (xflat, params["wbig"], params["bbig"], params["wih"],
                params["bi"], params["whh"], params["bhn"])
    scratch_bytes = T * B * 3 * HP * 4
    total_bytes = sum(int(a.size) * a.dtype.itemsize for a in operands) + B * H * 4 + scratch_bytes
    vmem_budget = min(max(2 * total_bytes + (1 << 20), 8 << 20), 64 << 20)

    vmem = pl.BlockSpec(memory_space=pltpu.MemorySpace.VMEM)
    kernel = functools.partial(grn_encoder_kernel, T=T, B=B, H=H, HP=HP)

    h = pl.pallas_call(
        kernel,
        out_shape=jax.ShapeDtypeStruct((B, H), jnp.float32),
        in_specs=[vmem] * 7,
        out_specs=vmem,
        scratch_shapes=[pltpu.VMEM((T * B, 3 * HP), jnp.float32)],
        compiler_params=pltpu.CompilerParams(vmem_limit_bytes=vmem_budget),
    )(*operands)

    return h[None]   # (1, B, H), matches nn.GRU hidden output


def build_gcn_norm_adj(edge_index, num_nodes):
    """Dense D^-1/2 (A + I) D^-1/2 built from edge_index (2, E), src -> dst.

    Graph-structure preprocessing (scatter) done in plain JAX once; it is parameter prep,
    not part of the per-forward compute.
    """
    src, dst = edge_index[0], edge_index[1]
    a = jnp.zeros((num_nodes, num_nodes), jnp.float32).at[dst, src].set(1.0)
    a = a + jnp.eye(num_nodes, dtype=jnp.float32)
    deg = a.sum(axis=1)
    d_inv_sqrt = jnp.where(deg > 0, 1.0 / jnp.sqrt(deg), 0.0)
    return d_inv_sqrt[:, None] * a * d_inv_sqrt[None, :]


def reference_forward(x_btnf, a_norm, wg, bg, wih, whh, bih, bhh):
    """Pure-JAX reference mirroring the PyTorch forward (GCN per (b,t) + ReLU + GRU)."""
    B, T, N, F = x_btnf.shape
    H = whh.shape[0]
    xw = jnp.einsum('btnf,fg->btng', x_btnf, wg)
    ax = jnp.einsum('nm,btmg->btng', a_norm, xw)
    g = jax.nn.relu(ax + bg[0])
    gf = g.reshape(B, T, -1)
    h = jnp.zeros((B, H), jnp.float32)
    for t in range(T):
        gi = gf[:, t] @ wih + bih[0]
        gh = h @ whh + bhh[0]
        r = jax.nn.sigmoid(gi[:, :H] + gh[:, :H])
        z = jax.nn.sigmoid(gi[:, H:2 * H] + gh[:, H:2 * H])
        n = jnp.tanh(gi[:, 2 * H:] + r * gh[:, 2 * H:])
        h = (1.0 - z) * n + z * h
    return h[None]


if __name__ == "__main__":
    # Small shapes consistent with the module's forward: x: (B, T, N, F), edge_index: (2, E)
    B, T, N, F = 2, 8, 8, 4            # batch, seq len, num_nodes, input_dim
    G, H = 8, 32                       # gcn_hidden_dim, encoder_gru_hidden_dim

    key = jax.random.PRNGKey(0)
    kx, kw1, kw2, kw3, kb1, kb2, kb3 = jax.random.split(key, 7)

    x = jax.random.normal(kx, (B, T, N, F), jnp.float32)

    # Ring graph edge_index (both directions), deterministic.
    src = jnp.arange(N, dtype=jnp.int32)
    dst = (src + 1) % N
    edge_index = jnp.stack([jnp.concatenate([src, dst]),
                            jnp.concatenate([dst, src])], axis=0)
    a_norm = build_gcn_norm_adj(edge_index, N)

    # Deterministic synthetic parameters (shapes follow the module's __init__).
    wg = 0.1 * jax.random.normal(kw1, (F, G), jnp.float32)           # GCNConv weight
    bg = 0.1 * jax.random.normal(kb1, (1, G), jnp.float32)           # GCNConv bias
    wih = 0.1 * jax.random.normal(kw2, (N * G, 3 * H), jnp.float32)  # GRU W_ih^T
    whh = 0.1 * jax.random.normal(kw3, (H, 3 * H), jnp.float32)      # GRU W_hh^T
    bih = 0.1 * jax.random.normal(kb2, (1, 3 * H), jnp.float32)      # GRU b_ih
    bhh = 0.1 * jax.random.normal(kb3, (1, 3 * H), jnp.float32)      # GRU b_hh

    # One-time parameter prep (cached across forwards), then the Pallas forward.
    params = prepare_params(a_norm, wg, bg, wih, whh, bih, bhh)
    hidden = grn_encoder_forward(x, params)
    hidden = jax.block_until_ready(hidden)

    ref = reference_forward(x, a_norm, wg, bg, wih, whh, bih, bhh)
    assert hidden.shape == (1, B, H)
    max_err = float(jnp.max(jnp.abs(hidden - ref)))
    assert jnp.allclose(hidden, ref, atol=1e-3, rtol=1e-3), f"max err {max_err}"

    print("KERNEL_OK")
</pallas_src>

<mosaic_0001>
module attributes {stable_mosaic.version = 11 : i64} {
  func.func @grn_encoder_kernel(%arg0: memref<16x32xf32, #tpu.memory_space<vmem>>, %arg1: memref<32x128xf32, #tpu.memory_space<vmem>>, %arg2: memref<1x128xf32, #tpu.memory_space<vmem>>, %arg3: memref<128x384xf32, #tpu.memory_space<vmem>>, %arg4: memref<1x384xf32, #tpu.memory_space<vmem>>, %arg5: memref<128x384xf32, #tpu.memory_space<vmem>>, %arg6: memref<1x128xf32, #tpu.memory_space<vmem>>, %arg7: memref<2x32xf32, #tpu.memory_space<vmem>>, %arg8: memref<16x384xf32, #tpu.memory_space<vmem>>) attributes {dimension_semantics = [], scalar_prefetch = 0 : i64, scratch_operands = 1 : i64, tpu.core_type = #tpu.core_type<tc>} {
    %c0 = arith.constant 0 : index
    %c0_0 = arith.constant 0 : index
    %0 = vector.load %arg0[%c0, %c0_0] : memref<16x32xf32, #tpu.memory_space<vmem>>, vector<16x32xf32>
    %c0_1 = arith.constant 0 : index
    %c0_2 = arith.constant 0 : index
    %1 = vector.load %arg1[%c0_1, %c0_2] : memref<32x128xf32, #tpu.memory_space<vmem>>, vector<32x128xf32>
    %cst = arith.constant dense<0.000000e+00> : vector<16x128xf32>
    %2 = tpu.matmul %0, %1, %cst {dimension_numbers = #tpu.dot_dimension_numbers<[1], [0], [0], [1], [0, 0, 1, 1], [], []>} : vector<16x32xf32>, vector<32x128xf32>, vector<16x128xf32> -> vector<16x128xf32>
    %c0_3 = arith.constant 0 : index
    %c0_4 = arith.constant 0 : index
    %3 = vector.load %arg2[%c0_3, %c0_4] : memref<1x128xf32, #tpu.memory_space<vmem>>, vector<1x128xf32>
    %4 = vector.broadcast %3 : vector<1x128xf32> to vector<16x128xf32>
    %5 = arith.addf %2, %4 : vector<16x128xf32>
    %cst_5 = arith.constant 0.000000e+00 : f32
    %6 = vector.broadcast %cst_5 : f32 to vector<16x128xf32>
    %7 = arith.maximumf %5, %6 : vector<16x128xf32>
    %c0_6 = arith.constant 0 : index
    %c0_7 = arith.constant 0 : index
    %8 = vector.load %arg3[%c0_6, %c0_7] : memref<128x384xf32, #tpu.memory_space<vmem>>, vector<128x384xf32>
    %cst_8 = arith.constant dense<0.000000e+00> : vector<16x384xf32>
    %9 = tpu.matmul %7, %8, %cst_8 {dimension_numbers = #tpu.dot_dimension_numbers<[1], [0], [0], [1], [0, 0, 1, 1], [], []>} : vector<16x128xf32>, vector<128x384xf32>, vector<16x384xf32> -> vector<16x384xf32>
    %c0_9 = arith.constant 0 : index
    %c0_10 = arith.constant 0 : index
    %10 = vector.load %arg4[%c0_9, %c0_10] : memref<1x384xf32, #tpu.memory_space<vmem>>, vector<1x384xf32>
    %11 = vector.broadcast %10 : vector<1x384xf32> to vector<16x384xf32>
    %12 = arith.addf %9, %11 : vector<16x384xf32>
    %c0_11 = arith.constant 0 : index
    %c0_12 = arith.constant 0 : index
    %13 = vector.load %arg8[%c0_11, %c0_12] : memref<16x384xf32, #tpu.memory_space<vmem>>, vector<16x384xf32>
    tpu.vector_store %arg8[%c0_11, %c0_12], %12 {strides = array<i32>} : memref<16x384xf32, #tpu.memory_space<vmem>>, vector<16x384xf32>,
    %c0_13 = arith.constant 0 : index
    %c0_14 = arith.constant 0 : index
    %14 = vector.load %arg5[%c0_13, %c0_14] : memref<128x384xf32, #tpu.memory_space<vmem>>, vector<128x384xf32>
    %c0_15 = arith.constant 0 : index
    %c0_16 = arith.constant 0 : index
    %15 = vector.load %arg6[%c0_15, %c0_16] : memref<1x128xf32, #tpu.memory_space<vmem>>, vector<1x128xf32>
    %16 = vector.shape_cast %15 : vector<1x128xf32> to vector<1x128xf32>
    %17 = vector.broadcast %16 : vector<1x128xf32> to vector<2x128xf32>
    %cst_17 = arith.constant 0.000000e+00 : f32
    %18 = vector.broadcast %cst_17 : f32 to vector<2x128xf32>
    %c0_i32 = arith.constant 0 : i32
    %c2_i32 = arith.constant 2 : i32
    %19 = arith.muli %c0_i32, %c2_i32 : i32
    %20 = arith.index_cast %19 : i32 to index
    %c0_18 = arith.constant 0 : index
    %21 = vector.load %arg8[%20, %c0_18] : memref<16x384xf32, #tpu.memory_space<vmem>>, vector<2x384xf32>
    %cst_19 = arith.constant dense<0.000000e+00> : vector<2x384xf32>
    %22 = tpu.matmul %18, %14, %cst_19 {dimension_numbers = #tpu.dot_dimension_numbers<[1], [0], [0], [1], [0, 0, 1, 1], [], []>} : vector<2x128xf32>, vector<128x384xf32>, vector<2x384xf32> -> vector<2x384xf32>
    %23 = vector.extract_strided_slice %21 {offsets = [0, 0], sizes = [2, 128], strides = [1, 1]} : vector<2x384xf32> to vector<2x128xf32>
    %24 = vector.extract_strided_slice %22 {offsets = [0, 0], sizes = [2, 128], strides = [1, 1]} : vector<2x384xf32> to vector<2x128xf32>
    %25 = arith.addf %23, %24 : vector<2x128xf32>
    %26 = arith.negf %25 : vector<2x128xf32>
    %27 = math.exp %26 : vector<2x128xf32>
    %cst_20 = arith.constant 1.000000e+00 : f32
    %28 = vector.broadcast %cst_20 : f32 to vector<2x128xf32>
    %29 = arith.addf %28, %27 : vector<2x128xf32>
    %30 = arith.divf %28, %29 : vector<2x128xf32>
    %31 = vector.extract_strided_slice %21 {offsets = [0, 128], sizes = [2, 128], strides = [1, 1]} : vector<2x384xf32> to vector<2x128xf32>
    %32 = vector.extract_strided_slice %22 {offsets = [0, 128], sizes = [2, 128], strides = [1, 1]} : vector<2x384xf32> to vector<2x128xf32>
    %33 = arith.addf %31, %32 : vector<2x128xf32>
    %34 = arith.negf %33 : vector<2x128xf32>
    %35 = math.exp %34 : vector<2x128xf32>
    %cst_21 = arith.constant 1.000000e+00 : f32
    %36 = vector.broadcast %cst_21 : f32 to vector<2x128xf32>
    %37 = arith.addf %36, %35 : vector<2x128xf32>
    %38 = arith.divf %36, %37 : vector<2x128xf32>
    %39 = vector.extract_strided_slice %21 {offsets = [0, 256], sizes = [2, 128], strides = [1, 1]} : vector<2x384xf32> to vector<2x128xf32>
    %40 = vector.extract_strided_slice %22 {offsets = [0, 256], sizes = [2, 128], strides = [1, 1]} : vector<2x384xf32> to vector<2x128xf32>
    %41 = arith.addf %40, %17 : vector<2x128xf32>
    %42 = arith.mulf %30, %41 : vector<2x128xf32>
    %43 = arith.addf %39, %42 : vector<2x128xf32>
    %44 = math.tanh %43 : vector<2x128xf32>
    %cst_22 = arith.constant 1.000000e+00 : f32
    %45 = vector.broadcast %cst_22 : f32 to vector<2x128xf32>
    %46 = arith.subf %45, %38 : vector<2x128xf32>
    %47 = arith.mulf %46, %44 : vector<2x128xf32>
    %48 = arith.mulf %38, %18 : vector<2x128xf32>
    %49 = arith.addf %47, %48 : vector<2x128xf32>
    %c1_i32 = arith.constant 1 : i32
    %c2_i32_23 = arith.constant 2 : i32
    %50 = arith.muli %c1_i32, %c2_i32_23 : i32
    %51 = arith.index_cast %50 : i32 to index
    %c0_24 = arith.constant 0 : index
    %52 = vector.load %arg8[%51, %c0_24] : memref<16x384xf32, #tpu.memory_space<vmem>>, vector<2x384xf32>
    %cst_25 = arith.constant dense<0.000000e+00> : vector<2x384xf32>
    %53 = tpu.matmul %49, %14, %cst_25 {dimension_numbers = #tpu.dot_dimension_numbers<[1], [0], [0], [1], [0, 0, 1, 1], [], []>} : vector<2x128xf32>, vector<128x384xf32>, vector<2x384xf32> -> vector<2x384xf32>
    %54 = vector.extract_strided_slice %52 {offsets = [0, 0], sizes = [2, 128], strides = [1, 1]} : vector<2x384xf32> to vector<2x128xf32>
    %55 = vector.extract_strided_slice %53 {offsets = [0, 0], sizes = [2, 128], strides = [1, 1]} : vector<2x384xf32> to vector<2x128xf32>
    %56 = arith.addf %54, %55 : vector<2x128xf32>
    %57 = arith.negf %56 : vector<2x128xf32>
    %58 = math.exp %57 : vector<2x128xf32>
    %cst_26 = arith.constant 1.000000e+00 : f32
    %59 = vector.broadcast %cst_26 : f32 to vector<2x128xf32>
    %60 = arith.addf %59, %58 : vector<2x128xf32>
    %61 = arith.divf %59, %60 : vector<2x128xf32>
    %62 = vector.extract_strided_slice %52 {offsets = [0, 128], sizes = [2, 128], strides = [1, 1]} : vector<2x384xf32> to vector<2x128xf32>
    %63 = vector.extract_strided_slice %53 {offsets = [0, 128], sizes = [2, 128], strides = [1, 1]} : vector<2x384xf32> to vector<2x128xf32>
    %64 = arith.addf %62, %63 : vector<2x128xf32>
    %65 = arith.negf %64 : vector<2x128xf32>
    %66 = math.exp %65 : vector<2x128xf32>
    %cst_27 = arith.constant 1.000000e+00 : f32
    %67 = vector.broadcast %cst_27 : f32 to vector<2x128xf32>
    %68 = arith.addf %67, %66 : vector<2x128xf32>
    %69 = arith.divf %67, %68 : vector<2x128xf32>
    %70 = vector.extract_strided_slice %52 {offsets = [0, 256], sizes = [2, 128], strides = [1, 1]} : vector<2x384xf32> to vector<2x128xf32>
    %71 = vector.extract_strided_slice %53 {offsets = [0, 256], sizes = [2, 128], strides = [1, 1]} : vector<2x384xf32> to vector<2x128xf32>
    %72 = arith.addf %71, %17 : vector<2x128xf32>
    %73 = arith.mulf %61, %72 : vector<2x128xf32>
    %74 = arith.addf %70, %73 : vector<2x128xf32>
    %75 = math.tanh %74 : vector<2x128xf32>
    %cst_28 = arith.constant 1.000000e+00 : f32
    %76 = vector.broadcast %cst_28 : f32 to vector<2x128xf32>
    %77 = arith.subf %76, %69 : vector<2x128xf32>
    %78 = arith.mulf %77, %75 : vector<2x128xf32>
    %79 = arith.mulf %69, %49 : vector<2x128xf32>
    %80 = arith.addf %78, %79 : vector<2x128xf32>
    %c2_i32_29 = arith.constant 2 : i32
    %c2_i32_30 = arith.constant 2 : i32
    %81 = arith.muli %c2_i32_29, %c2_i32_30 : i32
    %82 = arith.index_cast %81 : i32 to index
    %c0_31 = arith.constant 0 : index
    %83 = vector.load %arg8[%82, %c0_31] : memref<16x384xf32, #tpu.memory_space<vmem>>, vector<2x384xf32>
    %cst_32 = arith.constant dense<0.000000e+00> : vector<2x384xf32>
    %84 = tpu.matmul %80, %14, %cst_32 {dimension_numbers = #tpu.dot_dimension_numbers<[1], [0], [0], [1], [0, 0, 1, 1], [], []>} : vector<2x128xf32>, vector<128x384xf32>, vector<2x384xf32> -> vector<2x384xf32>
    %85 = vector.extract_strided_slice %83 {offsets = [0, 0], sizes = [2, 128], strides = [1, 1]} : vector<2x384xf32> to vector<2x128xf32>
    %86 = vector.extract_strided_slice %84 {offsets = [0, 0], sizes = [2, 128], strides = [1, 1]} : vector<2x384xf32> to vector<2x128xf32>
    %87 = arith.addf %85, %86 : vector<2x128xf32>
    %88 = arith.negf %87 : vector<2x128xf32>
    %89 = math.exp %88 : vector<2x128xf32>
    %cst_33 = arith.constant 1.000000e+00 : f32
    %90 = vector.broadcast %cst_33 : f32 to vector<2x128xf32>
    %91 = arith.addf %90, %89 : vector<2x128xf32>
    %92 = arith.divf %90, %91 : vector<2x128xf32>
    %93 = vector.extract_strided_slice %83 {offsets = [0, 128], sizes = [2, 128], strides = [1, 1]} : vector<2x384xf32> to vector<2x128xf32>
    %94 = vector.extract_strided_slice %84 {offsets = [0, 128], sizes = [2, 128], strides = [1, 1]} : vector<2x384xf32> to vector<2x128xf32>
    %95 = arith.addf %93, %94 : vector<2x128xf32>
    %96 = arith.negf %95 : vector<2x128xf32>
    %97 = math.exp %96 : vector<2x128xf32>
    %cst_34 = arith.constant 1.000000e+00 : f32
    %98 = vector.broadcast %cst_34 : f32 to vector<2x128xf32>
    %99 = arith.addf %98, %97 : vector<2x128xf32>
    %100 = arith.divf %98, %99 : vector<2x128xf32>
    %101 = vector.extract_strided_slice %83 {offsets = [0, 256], sizes = [2, 128], strides = [1, 1]} : vector<2x384xf32> to vector<2x128xf32>
    %102 = vector.extract_strided_slice %84 {offsets = [0, 256], sizes = [2, 128], strides = [1, 1]} : vector<2x384xf32> to vector<2x128xf32>
    %103 = arith.addf %102, %17 : vector<2x128xf32>
    %104 = arith.mulf %92, %103 : vector<2x128xf32>
    %105 = arith.addf %101, %104 : vector<2x128xf32>
    %106 = math.tanh %105 : vector<2x128xf32>
    %cst_35 = arith.constant 1.000000e+00 : f32
    %107 = vector.broadcast %cst_35 : f32 to vector<2x128xf32>
    %108 = arith.subf %107, %100 : vector<2x128xf32>
    %109 = arith.mulf %108, %106 : vector<2x128xf32>
    %110 = arith.mulf %100, %80 : vector<2x128xf32>
    %111 = arith.addf %109, %110 : vector<2x128xf32>
    %c3_i32 = arith.constant 3 : i32
    %c2_i32_36 = arith.constant 2 : i32
    %112 = arith.muli %c3_i32, %c2_i32_36 : i32
    %113 = arith.index_cast %112 : i32 to index
    %c0_37 = arith.constant 0 : index
    %114 = vector.load %arg8[%113, %c0_37] : memref<16x384xf32, #tpu.memory_space<vmem>>, vector<2x384xf32>
    %cst_38 = arith.constant dense<0.000000e+00> : vector<2x384xf32>
    %115 = tpu.matmul %111, %14, %cst_38 {dimension_numbers = #tpu.dot_dimension_numbers<[1], [0], [0], [1], [0, 0, 1, 1], [], []>} : vector<2x128xf32>, vector<128x384xf32>, vector<2x384xf32> -> vector<2x384xf32>
    %116 = vector.extract_strided_slice %114 {offsets = [0, 0], sizes = [2, 128], strides = [1, 1]} : vector<2x384xf32> to vector<2x128xf32>
    %117 = vector.extract_strided_slice %115 {offsets = [0, 0], sizes = [2, 128], strides = [1, 1]} : vector<2x384xf32> to vector<2x128xf32>
    %118 = arith.addf %116, %117 : vector<2x128xf32>
    %119 = arith.negf %118 : vector<2x128xf32>
    %120 = math.exp %119 : vector<2x128xf32>
    %cst_39 = arith.constant 1.000000e+00 : f32
    %121 = vector.broadcast %cst_39 : f32 to vector<2x128xf32>
    %122 = arith.addf %121, %120 : vector<2x128xf32>
    %123 = arith.divf %121, %122 : vector<2x128xf32>
    %124 = vector.extract_strided_slice %114 {offsets = [0, 128], sizes = [2, 128], strides = [1, 1]} : vector<2x384xf32> to vector<2x128xf32>
    %125 = vector.extract_strided_slice %115 {offsets = [0, 128], sizes = [2, 128], strides = [1, 1]} : vector<2x384xf32> to vector<2x128xf32>
    %126 = arith.addf %124, %125 : vector<2x128xf32>
    %127 = arith.negf %126 : vector<2x128xf32>
    %128 = math.exp %127 : vector<2x128xf32>
    %cst_40 = arith.constant 1.000000e+00 : f32
    %129 = vector.broadcast %cst_40 : f32 to vector<2x128xf32>
    %130 = arith.addf %129, %128 : vector<2x128xf32>
    %131 = arith.divf %129, %130 : vector<2x128xf32>
    %132 = vector.extract_strided_slice %114 {offsets = [0, 256], sizes = [2, 128], strides = [1, 1]} : vector<2x384xf32> to vector<2x128xf32>
    %133 = vector.extract_strided_slice %115 {offsets = [0, 256], sizes = [2, 128], strides = [1, 1]} : vector<2x384xf32> to vector<2x128xf32>
    %134 = arith.addf %133, %17 : vector<2x128xf32>
    %135 = arith.mulf %123, %134 : vector<2x128xf32>
    %136 = arith.addf %132, %135 : vector<2x128xf32>
    %137 = math.tanh %136 : vector<2x128xf32>
    %cst_41 = arith.constant 1.000000e+00 : f32
    %138 = vector.broadcast %cst_41 : f32 to vector<2x128xf32>
    %139 = arith.subf %138, %131 : vector<2x128xf32>
    %140 = arith.mulf %139, %137 : vector<2x128xf32>
    %141 = arith.mulf %131, %111 : vector<2x128xf32>
    %142 = arith.addf %140, %141 : vector<2x128xf32>
    %c4_i32 = arith.constant 4 : i32
    %c2_i32_42 = arith.constant 2 : i32
    %143 = arith.muli %c4_i32, %c2_i32_42 : i32
    %144 = arith.index_cast %143 : i32 to index
    %c0_43 = arith.constant 0 : index
    %145 = vector.load %arg8[%144, %c0_43] : memref<16x384xf32, #tpu.memory_space<vmem>>, vector<2x384xf32>
    %cst_44 = arith.constant dense<0.000000e+00> : vector<2x384xf32>
    %146 = tpu.matmul %142, %14, %cst_44 {dimension_numbers = #tpu.dot_dimension_numbers<[1], [0], [0], [1], [0, 0, 1, 1], [], []>} : vector<2x128xf32>, vector<128x384xf32>, vector<2x384xf32> -> vector<2x384xf32>
    %147 = vector.extract_strided_slice %145 {offsets = [0, 0], sizes = [2, 128], strides = [1, 1]} : vector<2x384xf32> to vector<2x128xf32>
    %148 = vector.extract_strided_slice %146 {offsets = [0, 0], sizes = [2, 128], strides = [1, 1]} : vector<2x384xf32> to vector<2x128xf32>
    %149 = arith.addf %147, %148 : vector<2x128xf32>
    %150 = arith.negf %149 : vector<2x128xf32>
    %151 = math.exp %150 : vector<2x128xf32>
    %cst_45 = arith.constant 1.000000e+00 : f32
    %152 = vector.broadcast %cst_45 : f32 to vector<2x128xf32>
    %153 = arith.addf %152, %151 : vector<2x128xf32>
    %154 = arith.divf %152, %153 : vector<2x128xf32>
    %155 = vector.extract_strided_slice %145 {offsets = [0, 128], sizes = [2, 128], strides = [1, 1]} : vector<2x384xf32> to vector<2x128xf32>
    %156 = vector.extract_strided_slice %146 {offsets = [0, 128], sizes = [2, 128], strides = [1, 1]} : vector<2x384xf32> to vector<2x128xf32>
    %157 = arith.addf %155, %156 : vector<2x128xf32>
    %158 = arith.negf %157 : vector<2x128xf32>
    %159 = math.exp %158 : vector<2x128xf32>
    %cst_46 = arith.constant 1.000000e+00 : f32
    %160 = vector.broadcast %cst_46 : f32 to vector<2x128xf32>
    %161 = arith.addf %160, %159 : vector<2x128xf32>
    %162 = arith.divf %160, %161 : vector<2x128xf32>
    %163 = vector.extract_strided_slice %145 {offsets = [0, 256], sizes = [2, 128], strides = [1, 1]} : vector<2x384xf32> to vector<2x128xf32>
    %164 = vector.extract_strided_slice %146 {offsets = [0, 256], sizes = [2, 128], strides = [1, 1]} : vector<2x384xf32> to vector<2x128xf32>
    %165 = arith.addf %164, %17 : vector<2x128xf32>
    %166 = arith.mulf %154, %165 : vector<2x128xf32>
    %167 = arith.addf %163, %166 : vector<2x128xf32>
    %168 = math.tanh %167 : vector<2x128xf32>
    %cst_47 = arith.constant 1.000000e+00 : f32
    %169 = vector.broadcast %cst_47 : f32 to vector<2x128xf32>
    %170 = arith.subf %169, %162 : vector<2x128xf32>
    %171 = arith.mulf %170, %168 : vector<2x128xf32>
    %172 = arith.mulf %162, %142 : vector<2x128xf32>
    %173 = arith.addf %171, %172 : vector<2x128xf32>
    %c5_i32 = arith.constant 5 : i32
    %c2_i32_48 = arith.constant 2 : i32
    %174 = arith.muli %c5_i32, %c2_i32_48 : i32
    %175 = arith.index_cast %174 : i32 to index
    %c0_49 = arith.constant 0 : index
    %176 = vector.load %arg8[%175, %c0_49] : memref<16x384xf32, #tpu.memory_space<vmem>>, vector<2x384xf32>
    %cst_50 = arith.constant dense<0.000000e+00> : vector<2x384xf32>
    %177 = tpu.matmul %173, %14, %cst_50 {dimension_numbers = #tpu.dot_dimension_numbers<[1], [0], [0], [1], [0, 0, 1, 1], [], []>} : vector<2x128xf32>, vector<128x384xf32>, vector<2x384xf32> -> vector<2x384xf32>
    %178 = vector.extract_strided_slice %176 {offsets = [0, 0], sizes = [2, 128], strides = [1, 1]} : vector<2x384xf32> to vector<2x128xf32>
    %179 = vector.extract_strided_slice %177 {offsets = [0, 0], sizes = [2, 128], strides = [1, 1]} : vector<2x384xf32> to vector<2x128xf32>
    %180 = arith.addf %178, %179 : vector<2x128xf32>
    %181 = arith.negf %180 : vector<2x128xf32>
    %182 = math.exp %181 : vector<2x128xf32>
    %cst_51 = arith.constant 1.000000e+00 : f32
    %183 = vector.broadcast %cst_51 : f32 to vector<2x128xf32>
    %184 = arith.addf %183, %182 : vector<2x128xf32>
    %185 = arith.divf %183, %184 : vector<2x128xf32>
    %186 = vector.extract_strided_slice %176 {offsets = [0, 128], sizes = [2, 128], strides = [1, 1]} : vector<2x384xf32> to vector<2x128xf32>
    %187 = vector.extract_strided_slice %177 {offsets = [0, 128], sizes = [2, 128], strides = [1, 1]} : vector<2x384xf32> to vector<2x128xf32>
    %188 = arith.addf %186, %187 : vector<2x128xf32>
    %189 = arith.negf %188 : vector<2x128xf32>
    %190 = math.exp %189 : vector<2x128xf32>
    %cst_52 = arith.constant 1.000000e+00 : f32
    %191 = vector.broadcast %cst_52 : f32 to vector<2x128xf32>
    %192 = arith.addf %191, %190 : vector<2x128xf32>
    %193 = arith.divf %191, %192 : vector<2x128xf32>
    %194 = vector.extract_strided_slice %176 {offsets = [0, 256], sizes = [2, 128], strides = [1, 1]} : vector<2x384xf32> to vector<2x128xf32>
    %195 = vector.extract_strided_slice %177 {offsets = [0, 256], sizes = [2, 128], strides = [1, 1]} : vector<2x384xf32> to vector<2x128xf32>
    %196 = arith.addf %195, %17 : vector<2x128xf32>
    %197 = arith.mulf %185, %196 : vector<2x128xf32>
    %198 = arith.addf %194, %197 : vector<2x128xf32>
    %199 = math.tanh %198 : vector<2x128xf32>
    %cst_53 = arith.constant 1.000000e+00 : f32
    %200 = vector.broadcast %cst_53 : f32 to vector<2x128xf32>
    %201 = arith.subf %200, %193 : vector<2x128xf32>
    %202 = arith.mulf %201, %199 : vector<2x128xf32>
    %203 = arith.mulf %193, %173 : vector<2x128xf32>
    %204 = arith.addf %202, %203 : vector<2x128xf32>
    %c6_i32 = arith.constant 6 : i32
    %c2_i32_54 = arith.constant 2 : i32
    %205 = arith.muli %c6_i32, %c2_i32_54 : i32
    %206 = arith.index_cast %205 : i32 to index
    %c0_55 = arith.constant 0 : index
    %207 = vector.load %arg8[%206, %c0_55] : memref<16x384xf32, #tpu.memory_space<vmem>>, vector<2x384xf32>
    %cst_56 = arith.constant dense<0.000000e+00> : vector<2x384xf32>
    %208 = tpu.matmul %204, %14, %cst_56 {dimension_numbers = #tpu.dot_dimension_numbers<[1], [0], [0], [1], [0, 0, 1, 1], [], []>} : vector<2x128xf32>, vector<128x384xf32>, vector<2x384xf32> -> vector<2x384xf32>
    %209 = vector.extract_strided_slice %207 {offsets = [0, 0], sizes = [2, 128], strides = [1, 1]} : vector<2x384xf32> to vector<2x128xf32>
    %210 = vector.extract_strided_slice %208 {offsets = [0, 0], sizes = [2, 128], strides = [1, 1]} : vector<2x384xf32> to vector<2x128xf32>
    %211 = arith.addf %209, %210 : vector<2x128xf32>
    %212 = arith.negf %211 : vector<2x128xf32>
    %213 = math.exp %212 : vector<2x128xf32>
    %cst_57 = arith.constant 1.000000e+00 : f32
    %214 = vector.broadcast %cst_57 : f32 to vector<2x128xf32>
    %215 = arith.addf %214, %213 : vector<2x128xf32>
    %216 = arith.divf %214, %215 : vector<2x128xf32>
    %217 = vector.extract_strided_slice %207 {offsets = [0, 128], sizes = [2, 128], strides = [1, 1]} : vector<2x384xf32> to vector<2x128xf32>
    %218 = vector.extract_strided_slice %208 {offsets = [0, 128], sizes = [2, 128], strides = [1, 1]} : vector<2x384xf32> to vector<2x128xf32>
    %219 = arith.addf %217, %218 : vector<2x128xf32>
    %220 = arith.negf %219 : vector<2x128xf32>
    %221 = math.exp %220 : vector<2x128xf32>
    %cst_58 = arith.constant 1.000000e+00 : f32
    %222 = vector.broadcast %cst_58 : f32 to vector<2x128xf32>
    %223 = arith.addf %222, %221 : vector<2x128xf32>
    %224 = arith.divf %222, %223 : vector<2x128xf32>
    %225 = vector.extract_strided_slice %207 {offsets = [0, 256], sizes = [2, 128], strides = [1, 1]} : vector<2x384xf32> to vector<2x128xf32>
    %226 = vector.extract_strided_slice %208 {offsets = [0, 256], sizes = [2, 128], strides = [1, 1]} : vector<2x384xf32> to vector<2x128xf32>
    %227 = arith.addf %226, %17 : vector<2x128xf32>
    %228 = arith.mulf %216, %227 : vector<2x128xf32>
    %229 = arith.addf %225, %228 : vector<2x128xf32>
    %230 = math.tanh %229 : vector<2x128xf32>
    %cst_59 = arith.constant 1.000000e+00 : f32
    %231 = vector.broadcast %cst_59 : f32 to vector<2x128xf32>
    %232 = arith.subf %231, %224 : vector<2x128xf32>
    %233 = arith.mulf %232, %230 : vector<2x128xf32>
    %234 = arith.mulf %224, %204 : vector<2x128xf32>
    %235 = arith.addf %233, %234 : vector<2x128xf32>
    %c7_i32 = arith.constant 7 : i32
    %c2_i32_60 = arith.constant 2 : i32
    %236 = arith.muli %c7_i32, %c2_i32_60 : i32
    %237 = arith.index_cast %236 : i32 to index
    %c0_61 = arith.constant 0 : index
    %238 = vector.load %arg8[%237, %c0_61] : memref<16x384xf32, #tpu.memory_space<vmem>>, vector<2x384xf32>
    %cst_62 = arith.constant dense<0.000000e+00> : vector<2x384xf32>
    %239 = tpu.matmul %235, %14, %cst_62 {dimension_numbers = #tpu.dot_dimension_numbers<[1], [0], [0], [1], [0, 0, 1, 1], [], []>} : vector<2x128xf32>, vector<128x384xf32>, vector<2x384xf32> -> vector<2x384xf32>
    %240 = vector.extract_strided_slice %238 {offsets = [0, 0], sizes = [2, 128], strides = [1, 1]} : vector<2x384xf32> to vector<2x128xf32>
    %241 = vector.extract_strided_slice %239 {offsets = [0, 0], sizes = [2, 128], strides = [1, 1]} : vector<2x384xf32> to vector<2x128xf32>
    %242 = arith.addf %240, %241 : vector<2x128xf32>
    %243 = arith.negf %242 : vector<2x128xf32>
    %244 = math.exp %243 : vector<2x128xf32>
    %cst_63 = arith.constant 1.000000e+00 : f32
    %245 = vector.broadcast %cst_63 : f32 to vector<2x128xf32>
    %246 = arith.addf %245, %244 : vector<2x128xf32>
    %247 = arith.divf %245, %246 : vector<2x128xf32>
    %248 = vector.extract_strided_slice %238 {offsets = [0, 128], sizes = [2, 128], strides = [1, 1]} : vector<2x384xf32> to vector<2x128xf32>
    %249 = vector.extract_strided_slice %239 {offsets = [0, 128], sizes = [2, 128], strides = [1, 1]} : vector<2x384xf32> to vector<2x128xf32>
    %250 = arith.addf %248, %249 : vector<2x128xf32>
    %251 = arith.negf %250 : vector<2x128xf32>
    %252 = math.exp %251 : vector<2x128xf32>
    %cst_64 = arith.constant 1.000000e+00 : f32
    %253 = vector.broadcast %cst_64 : f32 to vector<2x128xf32>
    %254 = arith.addf %253, %252 : vector<2x128xf32>
    %255 = arith.divf %253, %254 : vector<2x128xf32>
    %256 = vector.extract_strided_slice %238 {offsets = [0, 256], sizes = [2, 128], strides = [1, 1]} : vector<2x384xf32> to vector<2x128xf32>
    %257 = vector.extract_strided_slice %239 {offsets = [0, 256], sizes = [2, 128], strides = [1, 1]} : vector<2x384xf32> to vector<2x128xf32>
    %258 = arith.addf %257, %17 : vector<2x128xf32>
    %259 = arith.mulf %247, %258 : vector<2x128xf32>
    %260 = arith.addf %256, %259 : vector<2x128xf32>
    %261 = math.tanh %260 : vector<2x128xf32>
    %cst_65 = arith.constant 1.000000e+00 : f32
    %262 = vector.broadcast %cst_65 : f32 to vector<2x128xf32>
    %263 = arith.subf %262, %255 : vector<2x128xf32>
    %264 = arith.mulf %263, %261 : vector<2x128xf32>
    %265 = arith.mulf %255, %235 : vector<2x128xf32>
    %266 = arith.addf %264, %265 : vector<2x128xf32>
    %c8_i32 = arith.constant 8 : i32
    %267 = vector.extract_strided_slice %266 {offsets = [0, 0], sizes = [2, 32], strides = [1, 1]} : vector<2x128xf32> to vector<2x32xf32>
    %c0_66 = arith.constant 0 : index
    %c0_67 = arith.constant 0 : index
    %268 = vector.load %arg7[%c0_66, %c0_67] : memref<2x32xf32, #tpu.memory_space<vmem>>, vector<2x32xf32>
    tpu.vector_store %arg7[%c0_66, %c0_67], %267 {strides = array<i32>} : memref<2x32xf32, #tpu.memory_space<vmem>>, vector<2x32xf32>,
    return
  }
}

</mosaic_0001>

<bundles_post_ra>
// kernel: tpu_custom_call.1
= control target key start
LH: loop header
LB: loop body
LE: loop exit
PB: predicated region body
PF: predicated region fallthrough
CT: control target
= control target key end

     0   :  { %12 = vsyncpa [#allocation4], 0  ;;  %s2331_s0 = inlined_call_operand.hbm [shape: f32[16,32], index: 0, kind: input, shape index: {}]   ;;  %s2332_s1 = inlined_call_operand.hbm [shape: f32[32,128], index: 1, kind: input, shape index: {}]   ;;  %s2333_s2 = inlined_call_operand.hbm [shape: f32[1,128], index: 2, kind: input, shape index: {}]   ;;  %s2334_s3 = inlined_call_operand.hbm [shape: f32[128,384], index: 3, kind: input, shape index: {}]   ;;  %s2335_s4 = inlined_call_operand.vmem [shape: f32[1,384], index: 4, kind: input, shape index: {}]   ;;  %s2336_s5 = inlined_call_operand.hbm [shape: f32[128,384], index: 5, kind: input, shape index: {}]   ;;  %s2337_s6 = inlined_call_operand.vmem [shape: f32[1,128], index: 6, kind: input, shape index: {}]   ;;  %s2338_s7 = inlined_call_operand.hbm [shape: f32[2,32], index: 7, kind: output, shape index: {}]  }
   0x1   :  { %13 = vsyncpa [#allocation7], 0 }
   0x2   :  { %14 = vsyncpa [#allocation10], 0 }
   0x3   :  { %15 = vsyncpa [#allocation5], 0  ;;  %s33_s26 = sshll.u32 %s2332_s1, 4  ;;  %s1632_s27 = smov [#allocation6]   ;;  %s34_s26 = int_to_ptr.hbm [resolvable:$true] %s33_s26 }
   0x4   :  { %s35_s28 = sshll.u32 %s1632_s27, 4  ;;  %s57_s8 = sshll.u32 %s2334_s3, 4  ;;  %s36_s28 = int_to_ptr.vmem [resolvable:$true] %s35_s28  ;;  %s58_s8 = int_to_ptr.hbm [resolvable:$true] %s57_s8 }
   0x5   :  { %s1633_s9 = smov 128   ;;  %s1634_s10 = smov 8  }
   0x6   :  { %41 = dma.hbm_to_vmem [thread:$0]  %s34_s26, 512, %s36_s28, [#allocation7], %s1633_s9, %s1633_s9, %s1634_s10  }
   0x7   :  { %s1635_s11 = smov [#allocation9]   ;;  %s1636_s13 = smov 384  }
   0x8   :  { %s59_s12 = sshll.u32 %s1635_s11, 4  ;;  %s1637_s14 = smov 24   ;;  %s60_s12 = int_to_ptr.vmem [resolvable:$true] %s59_s12 }
   0x9   :  { %65 = dma.hbm_to_vmem [thread:$0]  %s58_s8, 6144, %s60_s12, [#allocation10], %s1636_s13, %s1636_s13, %s1637_s14  }
   0xa   :  { %s20_s16 = sshll.u32 %s2331_s0, 4  ;;  %s1638_s17 = smov [#allocation3]   ;;  %s21_s16 = int_to_ptr.hbm [resolvable:$true] %s20_s16 }
   0xb   :  { %s22_s18 = sshll.u32 %s1638_s17, 4  ;;  %s47_s20 = sshll.u32 %s2333_s2, 4  ;;  %s23_s18 = int_to_ptr.vmem [resolvable:$true] %s22_s18  ;;  %s48_s20 = int_to_ptr.hbm [resolvable:$true] %s47_s20 }
   0xc   :  { %28 = dma.hbm_to_vmem [thread:$0]  %s21_s16, 256, %s23_s18, [#allocation4], %s1633_s9, %s1633_s9, %s1634_s10  }
   0xd   :  { %s1639_s21 = smov [#allocation8]   ;;  %s72_s25 = sshll.u32 %s2336_s5, 4  ;;  %s73_s25 = int_to_ptr.hbm [resolvable:$true] %s72_s25 }
   0xe   :  { %s49_s22 = sshll.u32 %s1639_s21, 4  ;;  %s1640_s0 = smov [#allocation11]   ;;  %s50_s22 = int_to_ptr.vmem [resolvable:$true] %s49_s22 }
   0xf   :  { %52 = dma.hbm_to_vmem [thread:$0]  %s48_s20, 16, %s50_s22, [#allocation7]  }
  0x10   :  { %s74_s26 = sshll.u32 %s1640_s0, 4  ;;  %s75_s26 = int_to_ptr.vmem [resolvable:$true] %s74_s26 }
  0x11   :  { %80 = dma.hbm_to_vmem [thread:$0]  %s73_s25, 6144, %s75_s26, [#allocation10], %s1636_s13, %s1636_s13, %s1637_s14  }
  0x12   :  { %1624 = dma.done.wait [#allocation4], 256  }
  0x13   :  { %1625 = vsyncadd [#allocation4], 4294967040 }
  0x14   :  { %1626 = dma.done.wait [#allocation7], 528  }
  0x15   :  { %1627 = vsyncadd [#allocation7], 4294966768 }
  0x16   :  { %1628 = dma.done.wait [#allocation10], 12288  }
  0x17   :  { %1629 = vsyncadd [#allocation10], 4294955008  ;;  %v108_v0 = vld [vmem:[#allocation6 + $0x18] sm:$0xff]  ;;  %v107_v1 = vld [vmem:[#allocation6 + $0x10] sm:$0xff]  ;;  %vm113_vm0 = vcmask 261120   ;;  %s1308_s10 = sshll.u32 %s2338_s7, 4  ;;  %s1309_s10 = int_to_ptr.hbm [resolvable:$true] %s1308_s10 }
  0x18   :  { %132 = vmatpush.msra.mxu0 %v108_v0  ;;  %v106_v2 = vld [vmem:[#allocation6 + $0x8] sm:$0xff]  ;;  %v187_v4 = vld [vmem:[#allocation9 + $0x150] sm:$0xff]  ;;  %v105_v5 = vld [vmem:[#allocation6] sm:$0xff] }
  0x19   :  { %v190_v3 = vld [vmem:[#allocation9 + $0x168] sm:$0xff]  ;;  %v184_v6 = vld [vmem:[#allocation9 + $0x138] sm:$0xff]  ;;  %v191_v7 = vld [vmem:[#allocation9 + $0x170] sm:$0xff] }
  0x1a   :  { %133 = vmatpush.msra.mxu0 %v107_v1  ;;  %201 = vmatpush.msra.mxu1 %v190_v3  ;;  %v103_v8 = vld [vmem:[#allocation3] sm:$0xff]  ;;  %v192_v9 = vld [vmem:[#allocation9 + $0x178] sm:$0xff]  ;;  %v181_v11 = vld [vmem:[#allocation9 + $0x120] sm:$0xff] }
  0x1b   :  { %v188_v10 = vld [vmem:[#allocation9 + $0x158] sm:$0xff]  ;;  %224 = vmatpush.msra.mxu2 %v191_v7  ;;  %247 = vmatpush.msra.mxu3 %v192_v9  ;;  %v189_v12 = vld [vmem:[#allocation9 + $0x160] sm:$0xff]  ;;  %v178_v14 = vld [vmem:[#allocation9 + $0x108] sm:$0xff] }
  0x1c   :  { %134 = vmatpush.msra.mxu0 %v106_v2  ;;  %202 = vmatpush.msra.mxu1 %v187_v4  ;;  %v185_v13 = vld [vmem:[#allocation9 + $0x140] sm:$0xff]  ;;  %v186_v15 = vld [vmem:[#allocation9 + $0x148] sm:$0xff]  ;;  %v175_v17 = vld [vmem:[#allocation9 + $0xf0] sm:$0xff] }
  0x1d   :  { %225 = vmatpush.msra.mxu2 %v188_v10  ;;  %248 = vmatpush.msra.mxu3 %v189_v12  ;;  %v182_v16 = vld [vmem:[#allocation9 + $0x128] sm:$0xff]  ;;  %v183_v18 = vld [vmem:[#allocation9 + $0x130] sm:$0xff]  ;;  %v172_v22 = vld [vmem:[#allocation9 + $0xd8] sm:$0xff] }
  0x1e   :  { %135 = vmatpush.msra.mxu0 %v105_v5  ;;  %203 = vmatpush.msra.mxu1 %v184_v6  ;;  %v1699_v19 = vld [vmem:[#allocation11 + $0x168] sm:$0xff]  ;;  %v179_v20 = vld [vmem:[#allocation9 + $0x110] sm:$0xff]  ;;  %v180_v23 = vld [vmem:[#allocation9 + $0x118] sm:$0xff] }
  0x1f   :  { %1320 = vmatmul.msk.f32.vlgmr.msra.gmra.mxu0 %vm113_vm0, %v103_v8  ;;  %226 = vmatpush.msra.mxu2 %v185_v13  ;;  %v1701_v21 = vld [vmem:[#allocation11 + $0x150] sm:$0xff]  ;;  %v176_v25 = vld [vmem:[#allocation9 + $0xf8] sm:$0xff]  ;;  %v169_v26 = vld [vmem:[#allocation9 + $0xc0] sm:$0xff] }
  0x20   :  { %204 = vmatpush.msra.mxu1 %v181_v11  ;;  %249 = vmatpush.msra.mxu3 %v186_v15  ;;  %v104_v24 = vld [vmem:[#allocation3 + $0x8] sm:$0xff]  ;;  %v177_v27 = vld [vmem:[#allocation9 + $0x100] sm:$0xff]  ;;  %v166_v30 = vld [vmem:[#allocation9 + $0xa8] sm:$0xff] }
  0x21   :  { %227 = vmatpush.msra.mxu2 %v182_v16  ;;  %331 = vmatpush.msrb.mxu0 %v1699_v19  ;;  %v173_v28 = vld [vmem:[#allocation9 + $0xe0] sm:$0xff]  ;;  %v1705_v29 = vld [vmem:[#allocation11 + $0x138] sm:$0xff]  ;;  %v174_v31 = vld [vmem:[#allocation9 + $0xe8] sm:$0xff] }
  0x22   :  { %205 = vmatpush.msra.mxu1 %v178_v14  ;;  %250 = vmatpush.msra.mxu3 %v183_v18  ;;  %v170_v32 = vld [vmem:[#allocation9 + $0xc8] sm:$0xff]  ;;  %v1708_v33 = vld [vmem:[#allocation11 + $0x120] sm:$0xff]  ;;  %v163_v34 = vld [vmem:[#allocation9 + $0x90] sm:$0xff] }
  0x23   :  { %228 = vmatpush.msra.mxu2 %v179_v20  ;;  %332 = vmatpush.msrb.mxu0 %v1701_v21  ;;  %v171_v35 = vld [vmem:[#allocation9 + $0xd0] sm:$0xff]  ;;  %v1711_v37 = vld [vmem:[#allocation11 + $0x108] sm:$0xff]  ;;  %v160_v38 = vld [vmem:[#allocation9 + $0x78] sm:$0xff] }
  0x24   :  { %206 = vmatpush.msra.mxu1 %v175_v17  ;;  %251 = vmatpush.msra.mxu3 %v180_v23  ;;  %v167_v36 = vld [vmem:[#allocation9 + $0xb0] sm:$0xff]  ;;  %v168_v39 = vld [vmem:[#allocation9 + $0xb8] sm:$0xff]  ;;  %v157_v42 = vld [vmem:[#allocation9 + $0x60] sm:$0xff] }
  0x25   :  { %229 = vmatpush.msra.mxu2 %v176_v25  ;;  %333 = vmatpush.msrb.mxu0 %v1705_v29  ;;  %v164_v40 = vld [vmem:[#allocation9 + $0x98] sm:$0xff]  ;;  %v1714_v41 = vld [vmem:[#allocation11 + $0xf0] sm:$0xff]  ;;  %v165_v43 = vld [vmem:[#allocation9 + $0xa0] sm:$0xff] }
  0x26   :  { %207 = vmatpush.msra.mxu1 %v172_v22  ;;  %252 = vmatpush.msra.mxu3 %v177_v27  ;;  %v161_v44 = vld [vmem:[#allocation9 + $0x80] sm:$0xff]  ;;  %v1717_v45 = vld [vmem:[#allocation11 + $0xd8] sm:$0xff]  ;;  %v154_v46 = vld [vmem:[#allocation9 + $0x48] sm:$0xff] }
  0x27   :  { %1321 = vmatmul.msk.f32.gmra.mxu0 %vm113_vm0, %v104_v24  ;;  %230 = vmatpush.msra.mxu2 %v173_v28  ;;  %v162_v47 = vld [vmem:[#allocation9 + $0x88] sm:$0xff]  ;;  %v1720_v49 = vld [vmem:[#allocation11 + $0xc0] sm:$0xff]  ;;  %v151_v50 = vld [vmem:[#allocation9 + $0x30] sm:$0xff]  ;;  %v1641_v28 = vmov 0.0  }
  0x28   :  { %208 = vmatpush.msra.mxu1 %v169_v26  ;;  %253 = vmatpush.msra.mxu3 %v174_v31  ;;  %v158_v48 = vld [vmem:[#allocation9 + $0x68] sm:$0xff]  ;;  %v159_v51 = vld [vmem:[#allocation9 + $0x70] sm:$0xff]  ;;  %v148_v53 = vld [vmem:[#allocation9 + $0x18] sm:$0xff] }
  0x29   :  { %231 = vmatpush.msra.mxu2 %v170_v32  ;;  %334 = vmatpush.msrb.mxu0 %v1708_v33  ;;  %v155_v52 = vld [vmem:[#allocation9 + $0x50] sm:$0xff]  ;;  %v156_v54 = vld [vmem:[#allocation9 + $0x58] sm:$0xff]  ;;  %v145_v55 = vld [vmem:[#allocation9] sm:$0xff] }
  0x2a   :  { %209 = vmatpush.msra.mxu1 %v166_v30  ;;  %254 = vmatpush.msra.mxu3 %v171_v35  ;;  %v1724_v56 = vld [vmem:[#allocation11 + $0x170] sm:$0xff]  ;;  %v1726_v57 = vld [vmem:[#allocation11 + $0x158] sm:$0xff]  ;;  %v1729_v58 = vld [vmem:[#allocation11 + $0x140] sm:$0xff] }
  0x2b   :  { %232 = vmatpush.msra.mxu2 %v167_v36  ;;  %335 = vmatpush.msrb.mxu0 %v1711_v37  ;;  %v1732_v59 = vld [vmem:[#allocation11 + $0x128] sm:$0xff]  ;;  %v1735_v60 = vld [vmem:[#allocation11 + $0x110] sm:$0xff]  ;;  %v152_v61 = vld [vmem:[#allocation9 + $0x38] sm:$0xff] }
  0x2c   :  { %210 = vmatpush.msra.mxu1 %v163_v34  ;;  %255 = vmatpush.msra.mxu3 %v168_v39  ;;  %v153_v62 = vld [vmem:[#allocation9 + $0x40] sm:$0xff]  ;;  %v1739_v63 = vld [vmem:[#allocation11 + $0xa8] sm:$0xff]  ;;  %v1741_v0 = vld [vmem:[#allocation11 + $0xf8] sm:$0xff] }
  0x2d   :  { %233 = vmatpush.msra.mxu2 %v164_v40  ;;  %336 = vmatpush.msrb.mxu0 %v1714_v41  ;;  %v149_v1 = vld [vmem:[#allocation9 + $0x20] sm:$0xff]  ;;  %v150_v2 = vld [vmem:[#allocation9 + $0x28] sm:$0xff]  ;;  %v1745_v3 = vld [vmem:[#allocation11 + $0x90] sm:$0xff] }
  0x2e   :  { %211 = vmatpush.msra.mxu1 %v160_v38  ;;  %256 = vmatpush.msra.mxu3 %v165_v43  ;;  %v1747_v4 = vld [vmem:[#allocation11 + $0xe0] sm:$0xff]  ;;  %v146_v5 = vld [vmem:[#allocation9 + $0x8] sm:$0xff]  ;;  %v147_v6 = vld [vmem:[#allocation9 + $0x10] sm:$0xff] }
  0x2f   :  { %234 = vmatpush.msra.mxu2 %v161_v44  ;;  %337 = vmatpush.msrb.mxu0 %v1717_v45  ;;  %v1751_v7 = vld [vmem:[#allocation11 + $0x78] sm:$0xff]  ;;  %v1753_v8 = vld [vmem:[#allocation11 + $0xc8] sm:$0xff]  ;;  %v1757_v9 = vld [vmem:[#allocation11 + $0x60] sm:$0xff] }
  0x30   :  { %212 = vmatpush.msra.mxu1 %v157_v42  ;;  %257 = vmatpush.msra.mxu3 %v162_v47  ;;  %v1759_v10 = vld [vmem:[#allocation11 + $0xb0] sm:$0xff]  ;;  %v1761_v11 = vld [vmem:[#allocation11 + $0x178] sm:$0xff]  ;;  %v1767_v12 = vld [vmem:[#allocation11 + $0x48] sm:$0xff] }
  0x31   :  { %235 = vmatpush.msra.mxu2 %v158_v48  ;;  %338 = vmatpush.msrb.mxu0 %v1720_v49  ;;  %v1769_v13 = vld [vmem:[#allocation11 + $0x98] sm:$0xff]  ;;  %v1771_v14 = vld [vmem:[#allocation11 + $0x160] sm:$0xff]  ;;  %v1777_v15 = vld [vmem:[#allocation11 + $0x30] sm:$0xff] }
  0x32   :  { %213 = vmatpush.msra.mxu1 %v154_v46  ;;  %258 = vmatpush.msra.mxu3 %v159_v51  ;;  %2356 = vst [vmem:[#allocation17_spill] sm:$0xff] %v1777_v15  ;;  %v1779_v16 = vld [vmem:[#allocation11 + $0x80] sm:$0xff]  ;;  %v1781_v17 = vld [vmem:[#allocation11 + $0x148] sm:$0xff]  ;;  %v1786_v18 = vld [vmem:[#allocation11 + $0x18] sm:$0xff] }
  0x33   :  { %236 = vmatpush.msra.mxu2 %v155_v52  ;;  %339 = vmatpush.msrb.mxu0 %v1739_v63  ;;  %2357 = vst [vmem:[#allocation18_spill] sm:$0xff] %v1786_v18  ;;  %v1788_v20 = vld [vmem:[#allocation11 + $0x68] sm:$0xff]  ;;  %v1790_v22 = vld [vmem:[#allocation11 + $0x130] sm:$0xff]  ;;  %v1796_v23 = vld [vmem:[#allocation11] sm:$0xff] }
  0x34   :  { %214 = vmatpush.msra.mxu1 %v151_v50  ;;  %259 = vmatpush.msra.mxu3 %v156_v54  ;;  %2358 = vst [vmem:[#allocation19_spill] sm:$0xff] %v1796_v23  ;;  %v1798_v24 = vld [vmem:[#allocation11 + $0x50] sm:$0xff]  ;;  %v1800_v25 = vld [vmem:[#allocation11 + $0x118] sm:$0xff]  ;;  %v1808_v27 = vld [vmem:[#allocation11 + $0x100] sm:$0xff] }
  0x35   :  { %237 = vmatpush.msra.mxu2 %v152_v61  ;;  %340 = vmatpush.msrb.mxu0 %v1745_v3  ;;  %v1803_v26 = vld [vmem:[#allocation11 + $0x38] sm:$0xff]  ;;  %v1812_v30 = vld [vmem:[#allocation11 + $0x20] sm:$0xff]  ;;  %v1815_v31 = vld [vmem:[#allocation11 + $0xe8] sm:$0xff] }
  0x36   :  { %215 = vmatpush.msra.mxu1 %v148_v53  ;;  %260 = vmatpush.msra.mxu3 %v153_v62  ;;  %2359 = vst [vmem:[#allocation20_spill] sm:$0xff] %v1803_v26  ;;  %v1819_v32 = vld [vmem:[#allocation11 + $0x8] sm:$0xff]  ;;  %v1823_v34 = vld [vmem:[#allocation11 + $0xd0] sm:$0xff]  ;;  %v1829_v35 = vld [vmem:[#allocation11 + $0xb8] sm:$0xff] }
  0x37   :  { %238 = vmatpush.msra.mxu2 %v149_v1  ;;  %341 = vmatpush.msrb.mxu0 %v1751_v7  ;;  %2360 = vst [vmem:[#allocation21_spill] sm:$0xff] %v1812_v30  ;;  %v1834_v36 = vld [vmem:[#allocation11 + $0xa0] sm:$0xff]  ;;  %v1839_v38 = vld [vmem:[#allocation11 + $0x88] sm:$0xff]  ;;  %v1844_v39 = vld [vmem:[#allocation11 + $0x70] sm:$0xff] }
  0x38   :  { %216 = vmatpush.msra.mxu1 %v145_v55  ;;  %261 = vmatpush.msra.mxu3 %v150_v2  ;;  %2361 = vst [vmem:[#allocation22_spill] sm:$0xff] %v1819_v32  ;;  %v1349_v40 = vld [vmem:[#allocation8] ss:$0 sm:$0xff]  ;;  %v1854_v43 = vld [vmem:[#allocation11 + $0x40] sm:$0xff]  ;;  %v1859_v47 = vld [vmem:[#allocation11 + $0x28] sm:$0xff] }
  0x39   :  { %239 = vmatpush.msra.mxu2 %v146_v5  ;;  %342 = vmatpush.msrb.mxu0 %v1757_v9  ;;  %v1849_v42 = vld [vmem:[#allocation11 + $0x58] sm:$0xff]  ;;  %2362 = vst [vmem:[#allocation23_spill] sm:$0xff] %v1859_v47  ;;  %v1864_v50 = vld [vmem:[#allocation11 + $0x10] sm:$0xff] }
  0x3a   :  { %351 = vmatpush.msrb.mxu1 %v1724_v56  ;;  %262 = vmatpush.msra.mxu3 %v147_v6  ;;  %2363 = vst [vmem:[#allocation24_spill] sm:$0xff] %v1864_v50  ;;  %v193_v54 = vld [vmem:[%s2335_s4] sm:$0x7] }
  0x3b   :  { %371 = vmatpush.msrb.mxu2 %v1761_v11  ;;  %343 = vmatpush.msrb.mxu0 %v1767_v12  ;;  %v195_v55 = vperm.slane %v193_v54, 0  ;;  %v196_v1 = vperm.slane %v193_v54, 1  ;;  %v197_v2 = vperm.slane %v193_v54, 2 }
  0x3c   :  { %352 = vmatpush.msrb.mxu1 %v1726_v57  ;;  %442 = vmatpush.msrb.mxu3 %v1699_v19 }
  0x3d   :  { %372 = vmatpush.msrb.mxu2 %v1771_v14  ;;  %344 = vmatpush.msrb.mxu0 %v1777_v15 }
  0x3e   :  { %353 = vmatpush.msrb.mxu1 %v1729_v58  ;;  %443 = vmatpush.msrb.mxu3 %v1701_v21 }
  0x3f   :  { %373 = vmatpush.msrb.mxu2 %v1781_v17  ;;  %345 = vmatpush.msrb.mxu0 %v1786_v18 }
  0x40   :  { %354 = vmatpush.msrb.mxu1 %v1732_v59  ;;  %444 = vmatpush.msrb.mxu3 %v1705_v29 }
  0x41   :  { %374 = vmatpush.msrb.mxu2 %v1790_v22  ;;  %346 = vmatpush.msrb.mxu0 %v1796_v23 }
  0x42   :  { %355 = vmatpush.msrb.mxu1 %v1735_v60  ;;  %445 = vmatpush.msrb.mxu3 %v1708_v33 }
  0x43   :  { %375 = vmatpush.msrb.mxu2 %v1800_v25  ;;  %347 = vmatmul.f32.vlgmr.msrb.gmra.mxu0 %v1641_v28 }
  0x44   :  { %356 = vmatpush.msrb.mxu1 %v1741_v0  ;;  %446 = vmatpush.msrb.mxu3 %v1711_v37 }
  0x45   :  { %462 = vmatpush.msra.mxu0 %v1724_v56  ;;  %376 = vmatpush.msrb.mxu2 %v1808_v27 }
  0x46   :  { %357 = vmatpush.msrb.mxu1 %v1747_v4  ;;  %447 = vmatpush.msrb.mxu3 %v1714_v41 }
  0x47   :  { %463 = vmatpush.msra.mxu0 %v1726_v57  ;;  %377 = vmatpush.msrb.mxu2 %v1815_v31 }
  0x48   :  { %358 = vmatpush.msrb.mxu1 %v1753_v8  ;;  %448 = vmatpush.msrb.mxu3 %v1717_v45 }
  0x49   :  { %464 = vmatpush.msra.mxu0 %v1729_v58  ;;  %378 = vmatpush.msrb.mxu2 %v1823_v34 }
  0x4a   :  { %359 = vmatpush.msrb.mxu1 %v1759_v10  ;;  %449 = vmatpush.msrb.mxu3 %v1720_v49 }
  0x4b   :  { %465 = vmatpush.msra.mxu0 %v1732_v59  ;;  %379 = vmatpush.msrb.mxu2 %v1829_v35 }
  0x4c   :  { %360 = vmatpush.msrb.mxu1 %v1769_v13  ;;  %450 = vmatpush.msrb.mxu3 %v1739_v63 }
  0x4d   :  { %466 = vmatpush.msra.mxu0 %v1735_v60  ;;  %380 = vmatpush.msrb.mxu2 %v1834_v36 }
  0x4e   :  { %361 = vmatpush.msrb.mxu1 %v1779_v16  ;;  %451 = vmatpush.msrb.mxu3 %v1745_v3 }
  0x4f   :  { %467 = vmatpush.msra.mxu0 %v1741_v0  ;;  %381 = vmatpush.msrb.mxu2 %v1839_v38 }
  0x50   :  { %362 = vmatpush.msrb.mxu1 %v1788_v20  ;;  %452 = vmatpush.msrb.mxu3 %v1751_v7 }
  0x51   :  { %468 = vmatpush.msra.mxu0 %v1747_v4  ;;  %382 = vmatpush.msrb.mxu2 %v1844_v39 }
  0x52   :  { %363 = vmatpush.msrb.mxu1 %v1798_v24  ;;  %453 = vmatpush.msrb.mxu3 %v1757_v9 }
  0x53   :  { %469 = vmatpush.msra.mxu0 %v1753_v8  ;;  %383 = vmatpush.msrb.mxu2 %v1849_v42 }
  0x54   :  { %364 = vmatpush.msrb.mxu1 %v1803_v26  ;;  %454 = vmatpush.msrb.mxu3 %v1767_v12 }
  0x55   :  { %470 = vmatpush.msra.mxu0 %v1759_v10  ;;  %384 = vmatpush.msrb.mxu2 %v1854_v43 }
  0x56   :  { %365 = vmatpush.msrb.mxu1 %v1812_v30  ;;  %455 = vmatpush.msrb.mxu3 %v1777_v15 }
  0x57   :  { %471 = vmatpush.msra.mxu0 %v1769_v13  ;;  %385 = vmatpush.msrb.mxu2 %v1859_v47 }
  0x58   :  { %366 = vmatpush.msrb.mxu1 %v1819_v32  ;;  %456 = vmatpush.msrb.mxu3 %v1786_v18 }
  0x59   :  { %386 = vmatpush.msrb.mxu2 %v1864_v50  ;;  %472 = vmatpush.msra.mxu0 %v1779_v16 }
  0x5a   :  { %457 = vmatpush.msrb.mxu3 %v1796_v23 }
  0x5b   :  { %473 = vmatpush.msra.mxu0 %v1788_v20 }
  0x5d   :  { %474 = vmatpush.msra.mxu0 %v1798_v24 }
  0x5f   :  { %475 = vmatpush.msra.mxu0 %v1803_v26 }
  0x61   :  { %476 = vmatpush.msra.mxu0 %v1812_v30 }
  0x63   :  { %477 = vmatpush.msra.mxu0 %v1819_v32 }
  0x65   :  { %608 = vmatpush.msrb.mxu0 %v1761_v11 }
  0x67   :  { %609 = vmatpush.msrb.mxu0 %v1771_v14 }
  0x69   :  { %610 = vmatpush.msrb.mxu0 %v1781_v17 }
  0x6b   :  { %611 = vmatpush.msrb.mxu0 %v1790_v22 }
  0x6d   :  { %612 = vmatpush.msrb.mxu0 %v1800_v25 }
  0x6f   :  { %613 = vmatpush.msrb.mxu0 %v1808_v27 }
  0x71   :  { %614 = vmatpush.msrb.mxu0 %v1815_v31 }
  0x73   :  { %615 = vmatpush.msrb.mxu0 %v1823_v34 }
  0x75   :  { %616 = vmatpush.msrb.mxu0 %v1829_v35 }
  0x77   :  { %617 = vmatpush.msrb.mxu0 %v1834_v36 }
  0x79   :  { %618 = vmatpush.msrb.mxu0 %v1839_v38 }
  0x7b   :  { %619 = vmatpush.msrb.mxu0 %v1844_v39 }
  0x7d   :  { %620 = vmatpush.msrb.mxu0 %v1849_v42 }
  0x7f   :  { %621 = vmatpush.msrb.mxu0 %v1854_v43 }
  0x81   :  { %622 = vmatpush.msrb.mxu0 %v1859_v47 }
  0x83   :  { %623 = vmatpush.msrb.mxu0 %v1864_v50 }
  0x9c   :  { %v137_v44 = vpop.f32.mrf.mxu0 }
  0x9d   :  { %v138_v46 = vadd.f32 %v1349_v40, %v137_v44 }
  0x9f   :  { %v143_v48 = vmax.f32 %v138_v46, 0.0 }
  0xa1   :  { %217 = vmatmul.f32.vlgmr.msra.gmra.mxu1 %v143_v48  ;;  %240 = vmatmul.f32.vlgmr.msra.gmra.mxu2 %v143_v48 }
  0xa2   :  { %263 = vmatmul.f32.vlgmr.msra.gmra.mxu3 %v143_v48  ;;  %482 = vmatpush.msra.mxu1 %v1761_v11 }
  0xa3   :  { %568 = vmatpush.msra.mxu2 %v1699_v19  ;;  %588 = vmatpush.msra.mxu3 %v1724_v56 }
  0xa4   :  { %v140_v51 = vpop.f32.mrf.mxu0  ;;  %483 = vmatpush.msra.mxu1 %v1771_v14 }
  0xa5   :  { %v141_v52 = vadd.f32 %v1349_v40, %v140_v51  ;;  %569 = vmatpush.msra.mxu2 %v1701_v21  ;;  %589 = vmatpush.msra.mxu3 %v1726_v57 }
  0xa6   :  { %484 = vmatpush.msra.mxu1 %v1781_v17 }
  0xa7   :  { %v144_v53 = vmax.f32 %v141_v52, 0.0  ;;  %570 = vmatpush.msra.mxu2 %v1705_v29  ;;  %590 = vmatpush.msra.mxu3 %v1729_v58 }
  0xa8   :  { %485 = vmatpush.msra.mxu1 %v1790_v22 }
  0xa9   :  { %220 = vmatmul.f32.gmra.mxu1 %v144_v53  ;;  %243 = vmatmul.f32.gmra.mxu2 %v144_v53 }
  0xaa   :  { %266 = vmatmul.f32.gmra.mxu3 %v144_v53  ;;  %486 = vmatpush.msra.mxu1 %v1800_v25 }
  0xab   :  { %571 = vmatpush.msra.mxu2 %v1708_v33  ;;  %591 = vmatpush.msra.mxu3 %v1732_v59 }
  0xac   :  { %487 = vmatpush.msra.mxu1 %v1808_v27 }
  0xad   :  { %572 = vmatpush.msra.mxu2 %v1711_v37  ;;  %592 = vmatpush.msra.mxu3 %v1735_v60 }
  0xae   :  { %488 = vmatpush.msra.mxu1 %v1815_v31 }
  0xaf   :  { %573 = vmatpush.msra.mxu2 %v1714_v41  ;;  %593 = vmatpush.msra.mxu3 %v1741_v0 }
  0xb0   :  { %489 = vmatpush.msra.mxu1 %v1823_v34 }
  0xb1   :  { %367 = vmatmul.f32.vlgmr.msrb.gmra.mxu1 %v1641_v28  ;;  %387 = vmatmul.f32.vlgmr.msrb.gmra.mxu2 %v1641_v28 }
  0xb2   :  { %490 = vmatpush.msra.mxu1 %v1829_v35  ;;  %574 = vmatpush.msra.mxu2 %v1717_v45 }
  0xb3   :  { %594 = vmatpush.msra.mxu3 %v1747_v4 }
  0xb4   :  { %491 = vmatpush.msra.mxu1 %v1834_v36  ;;  %575 = vmatpush.msra.mxu2 %v1720_v49 }
  0xb5   :  { %595 = vmatpush.msra.mxu3 %v1753_v8 }
  0xb6   :  { %492 = vmatpush.msra.mxu1 %v1839_v38  ;;  %576 = vmatpush.msra.mxu2 %v1739_v63 }
  0xb7   :  { %596 = vmatpush.msra.mxu3 %v1759_v10 }
  0xb8   :  { %493 = vmatpush.msra.mxu1 %v1844_v39  ;;  %577 = vmatpush.msra.mxu2 %v1745_v3 }
  0xb9   :  { %597 = vmatpush.msra.mxu3 %v1769_v13 }
  0xba   :  { %494 = vmatpush.msra.mxu1 %v1849_v42  ;;  %578 = vmatpush.msra.mxu2 %v1751_v7 }
  0xbb   :  { %598 = vmatpush.msra.mxu3 %v1779_v16 }
  0xbc   :  { %495 = vmatpush.msra.mxu1 %v1854_v43  ;;  %579 = vmatpush.msra.mxu2 %v1757_v9 }
  0xbd   :  { %599 = vmatpush.msra.mxu3 %v1788_v20 }
  0xbe   :  { %496 = vmatpush.msra.mxu1 %v1859_v47  ;;  %580 = vmatpush.msra.mxu2 %v1767_v12 }
  0xbf   :  { %600 = vmatpush.msra.mxu3 %v1798_v24 }
  0xc0   :  { %497 = vmatpush.msra.mxu1 %v1864_v50  ;;  %581 = vmatpush.msra.mxu2 %v1777_v15  ;;  %v348_v46 = vpop.f32.mrf.mxu0 }
  0xc1   :  { %601 = vmatpush.msra.mxu3 %v1803_v26 }
  0xc2   :  { %693 = vmatpush.msrb.mxu1 %v1699_v19  ;;  %582 = vmatpush.msra.mxu2 %v1786_v18 }
  0xc3   :  { %602 = vmatpush.msra.mxu3 %v1812_v30 }
  0xc4   :  { %694 = vmatpush.msrb.mxu1 %v1701_v21  ;;  %583 = vmatpush.msra.mxu2 %v1796_v23 }
  0xc5   :  { %603 = vmatpush.msra.mxu3 %v1819_v32 }
  0xc6   :  { %713 = vmatpush.msrb.mxu2 %v1724_v56  ;;  %695 = vmatpush.msrb.mxu1 %v1705_v29 }
  0xc8   :  { %714 = vmatpush.msrb.mxu2 %v1726_v57  ;;  %696 = vmatpush.msrb.mxu1 %v1708_v33 }
  0xca   :  { %715 = vmatpush.msrb.mxu2 %v1729_v58  ;;  %697 = vmatpush.msrb.mxu1 %v1711_v37 }
  0xcc   :  { %716 = vmatpush.msrb.mxu2 %v1732_v59  ;;  %698 = vmatpush.msrb.mxu1 %v1714_v41 }
  0xce   :  { %717 = vmatpush.msrb.mxu2 %v1735_v60  ;;  %699 = vmatpush.msrb.mxu1 %v1717_v45 }
  0xd0   :  { %718 = vmatpush.msrb.mxu2 %v1741_v0  ;;  %700 = vmatpush.msrb.mxu1 %v1720_v49 }
  0xd2   :  { %719 = vmatpush.msrb.mxu2 %v1747_v4  ;;  %701 = vmatpush.msrb.mxu1 %v1739_v63 }
  0xd4   :  { %720 = vmatpush.msrb.mxu2 %v1753_v8  ;;  %702 = vmatpush.msrb.mxu1 %v1745_v3 }
  0xd6   :  { %721 = vmatpush.msrb.mxu2 %v1759_v10  ;;  %703 = vmatpush.msrb.mxu1 %v1751_v7 }
  0xd8   :  { %722 = vmatpush.msrb.mxu2 %v1769_v13  ;;  %704 = vmatpush.msrb.mxu1 %v1757_v9 }
  0xda   :  { %723 = vmatpush.msrb.mxu2 %v1779_v16  ;;  %705 = vmatpush.msrb.mxu1 %v1767_v12 }
  0xdc   :  { %724 = vmatpush.msrb.mxu2 %v1788_v20  ;;  %706 = vmatpush.msrb.mxu1 %v1777_v15 }
  0xde   :  { %725 = vmatpush.msrb.mxu2 %v1798_v24  ;;  %707 = vmatpush.msrb.mxu1 %v1786_v18 }
  0xe0   :  { %726 = vmatpush.msrb.mxu2 %v1803_v26  ;;  %708 = vmatpush.msrb.mxu1 %v1796_v23 }
  0xe2   :  { %727 = vmatpush.msrb.mxu2 %v1812_v30 }
  0xe4   :  { %728 = vmatpush.msrb.mxu2 %v1819_v32 }
 0x11e   :  { %v218_v61 = vpop.f32.mrf.mxu1 }
 0x11f   :  { %v219_v62 = vadd.f32 %v218_v61, %v195_v55 }
 0x121   :  { %270 = vst [vmem:[#allocation2 + $0x28] sm:$0xff] %v219_v62 }
 0x124   :  { %v241_v5 = vpop.f32.mrf.mxu2 }
 0x125   :  { %v242_v6 = vadd.f32 %v241_v5, %v196_v1  ;;  %v264_v28 = vpop.f32.mrf.mxu3 }
 0x126   :  { %v265_v40 = vadd.f32 %v264_v28, %v197_v2  ;;  %v221_v44 = vpop.f32.mrf.mxu1 }
 0x127   :  { %271 = vst [vmem:[#allocation2 + $0x10] sm:$0xff] %v242_v6  ;;  %v222_v48 = vadd.f32 %v221_v44, %v195_v55 }
 0x128   :  { %272 = vst [vmem:[#allocation2 + $0x8] sm:$0xff] %v265_v40  ;;  %v328_v51 = vld [vmem:[#allocation2 + $0x28] sm:$0x3] }
 0x129   :  { %273 = vst [vmem:[#allocation2] sm:$0xff] %v222_v48  ;;  %v391_v52 = vadd.f32 %v348_v46, %v328_v51 }
 0x12b   :  { %v1322_v53 = vmul.f32 -1.442695, %v391_v52 }
 0x12c   :  { %v244_v32 = vpop.f32.mrf.mxu2 }
 0x12d   :  { %1351 = vpow2.f32 %v1322_v53  ;;  %v245_v23 = vadd.f32 %v244_v32, %v196_v1  ;;  %v267_v61 = vpop.f32.mrf.mxu3  ;;  %v1981_v32 = vld [vmem:[%s2337_s6] ss:$0 sm:$0xff] }
 0x12e   :  { %v329_v62 = vld [vmem:[#allocation2 + $0x10] sm:$0x3]  ;;  %v368_v50 = vpop.f32.mrf.mxu1  ;;  %v268_v54 = vadd.f32 %v267_v61, %v197_v2  ;;  %2364 = vst [vmem:[#allocation25_spill] sm:$0xff] %v1981_v32 }
 0x12f   :  { %v411_v30 = vadd.f32 %v368_v50, %v329_v62  ;;  %274 = vst [vmem:[#allocation2 + $0x18] sm:$0xff] %v245_v23  ;;  %v330_v18 = vld [vmem:[#allocation2 + $0x8] sm:$0x3] }
 0x130   :  { %275 = vst [vmem:[#allocation2 + $0x20] sm:$0xff] %v268_v54 }
 0x131   :  { %v1323_v5 = vmul.f32 -1.442695, %v411_v30 }
 0x133   :  { %v1352_v28 = vpop.eup %1351  ;;  %1353 = vpow2.f32 %v1323_v5 }
 0x134   :  { %v395_v6 = vadd.f32 1.0, %v1352_v28  ;;  %v388_v2 = vpop.f32.mrf.mxu2 }
 0x135   :  { %v431_v53 = vadd.f32 %v1981_v32, %v388_v2 }
 0x136   :  { %1355 = vrcp.f32 %v395_v6  ;;  %v407_v50 = vand.u32 2147483648, %v395_v6  ;;  %v405_v30 = vand.u32 2147483647, %v395_v6  ;;  %vm401_vm2 = vweird.f32 %v395_v6 }
 0x138   :  { %v408_v61 = vor.u32 1.1754944e-38, %v407_v50  ;;  %vm406_vm4 = vcmp.eq.f32.partialorder %v405_v30, 8.507059e+37 }
 0x139   :  { %v1354_v55 = vpop.eup %1353 }
 0x13a   :  { %v415_v40 = vadd.f32 1.0, %v1354_v55 }
 0x13c   :  { %v1356_v44 = vpop.eup %1355  ;;  %1357 = vrcp.f32 %v415_v40  ;;  %vm421_vm6 = vweird.f32 %v415_v40 }
 0x13d   :  { %v397_v46 = vmul.f32 %v1356_v44, %v395_v6  ;;  %vm402_vm1 = vweird.f32 %v1356_v44 }
 0x13e   :  { %vm403_vm3 = vmor %vm401_vm2, %vm402_vm1 }
 0x13f   :  { %v398_v1 = vsub.f32 1.0, %v397_v46  ;;  %v427_v46 = vand.u32 2147483648, %v415_v40 }
 0x141   :  { %v399_v23 = vmul.f32 %v1356_v44, %v398_v1  ;;  %v425_v1 = vand.u32 2147483647, %v415_v40 }
 0x142   :  { %v1358_v48 = vpop.eup %1357 }
 0x143   :  { %v417_v51 = vmul.f32 %v1358_v48, %v415_v40  ;;  %v400_v52 = vadd.f32 %v1356_v44, %v399_v23  ;;  %vm422_vm5 = vweird.f32 %v1358_v48  ;;  %v428_v23 = vor.u32 1.1754944e-38, %v427_v46  ;;  %v2368_v40 = vld [vmem:[#allocation21_spill] sm:$0xff] }
 0x144   :  { %vm423_vm7 = vmor %vm421_vm6, %vm422_vm5  ;;  %vm426_vm8 = vcmp.eq.f32.partialorder %v425_v1, 8.507059e+37 }
 0x145   :  { %v418_v62 = vsub.f32 1.0, %v417_v51  ;;  %v404_v54 = vsel %vm403_vm3, %v1356_v44, %v400_v52 }
 0x146   :  { %v409_v5 = vsel %vm406_vm4, %v408_v61, %v404_v54  ;;  %v2371_v61 = vld [vmem:[#allocation22_spill] sm:$0xff] }
 0x147   :  { %v419_v28 = vmul.f32 %v1358_v48, %v418_v62  ;;  %v432_v55 = vmul.f32 %v431_v53, %v409_v5  ;;  %v2370_v53 = vld [vmem:[#allocation19_spill] sm:$0xff]  ;;  %v440_v5 = vld [vmem:[#allocation2 + $0x10] sm:$0xc] }
 0x149   :  { %v433_v47 = vadd.f32 %v432_v55, %v330_v18  ;;  %v420_v26 = vadd.f32 %v1358_v48, %v419_v28  ;;  %v2365_v18 = vld [vmem:[#allocation20_spill] sm:$0xff] }
 0x14b   :  { %1359 = vtanh.f32 %v433_v47  ;;  %v424_v6 = vsel %vm423_vm7, %v1358_v48, %v420_v26  ;;  %v2366_v26 = vld [vmem:[#allocation23_spill] sm:$0xff]  ;;  %v2367_v47 = vld [vmem:[#allocation18_spill] sm:$0xff]  ;;  %v2369_v48 = vld [vmem:[#allocation24_spill] sm:$0xff] }
 0x14c   :  { %v429_v2 = vsel %vm426_vm8, %v428_v23, %v424_v6  ;;  %v439_v6 = vld [vmem:[#allocation2 + $0x28] sm:$0xc] }
 0x14d   :  { %v435_v50 = vsub.f32 1.0, %v429_v2  ;;  %v437_v30 = vmul.f32 0.0, %v429_v2 }
 0x151   :  { %v1360_v51 = vpop.eup %1359 }
 0x152   :  { %v436_v44 = vmul.f32 %v1360_v51, %v435_v50 }
 0x154   :  { %v1984_v52 = vadd.f32 %v437_v30, %v436_v44 }
 0x156   :  { %458 = vmatmul.f32.vlgmr.msrb.gmra.mxu3 %v1984_v52  ;;  %478 = vmatmul.f32.vlgmr.msra.gmra.mxu0 %v1984_v52 }
 0x157   :  { %498 = vmatmul.f32.vlgmr.msra.gmra.mxu1 %v1984_v52  ;;  %733 = vmatpush.msrb.mxu3 %v1761_v11 }
 0x158   :  { %818 = vmatpush.msra.mxu0 %v1699_v19  ;;  %838 = vmatpush.msra.mxu1 %v1724_v56 }
 0x159   :  { %734 = vmatpush.msrb.mxu3 %v1771_v14 }
 0x15a   :  { %819 = vmatpush.msra.mxu0 %v1701_v21  ;;  %839 = vmatpush.msra.mxu1 %v1726_v57 }
 0x15b   :  { %735 = vmatpush.msrb.mxu3 %v1781_v17 }
 0x15c   :  { %820 = vmatpush.msra.mxu0 %v1705_v29  ;;  %840 = vmatpush.msra.mxu1 %v1729_v58 }
 0x15d   :  { %736 = vmatpush.msrb.mxu3 %v1790_v22 }
 0x15e   :  { %821 = vmatpush.msra.mxu0 %v1708_v33  ;;  %841 = vmatpush.msra.mxu1 %v1732_v59 }
 0x15f   :  { %737 = vmatpush.msrb.mxu3 %v1800_v25 }
 0x160   :  { %822 = vmatpush.msra.mxu0 %v1711_v37  ;;  %842 = vmatpush.msra.mxu1 %v1735_v60 }
 0x161   :  { %738 = vmatpush.msrb.mxu3 %v1808_v27 }
 0x162   :  { %823 = vmatpush.msra.mxu0 %v1714_v41  ;;  %843 = vmatpush.msra.mxu1 %v1741_v0 }
 0x163   :  { %739 = vmatpush.msrb.mxu3 %v1815_v31 }
 0x164   :  { %824 = vmatpush.msra.mxu0 %v1717_v45  ;;  %844 = vmatpush.msra.mxu1 %v1747_v4 }
 0x165   :  { %740 = vmatpush.msrb.mxu3 %v1823_v34 }
 0x166   :  { %825 = vmatpush.msra.mxu0 %v1720_v49  ;;  %845 = vmatpush.msra.mxu1 %v1753_v8 }
 0x167   :  { %741 = vmatpush.msrb.mxu3 %v1829_v35 }
 0x168   :  { %826 = vmatpush.msra.mxu0 %v1739_v63  ;;  %846 = vmatpush.msra.mxu1 %v1759_v10 }
 0x169   :  { %742 = vmatpush.msrb.mxu3 %v1834_v36 }
 0x16a   :  { %827 = vmatpush.msra.mxu0 %v1745_v3  ;;  %847 = vmatpush.msra.mxu1 %v1769_v13 }
 0x16b   :  { %743 = vmatpush.msrb.mxu3 %v1839_v38 }
 0x16c   :  { %828 = vmatpush.msra.mxu0 %v1751_v7  ;;  %848 = vmatpush.msra.mxu1 %v1779_v16 }
 0x16d   :  { %744 = vmatpush.msrb.mxu3 %v1844_v39 }
 0x16e   :  { %829 = vmatpush.msra.mxu0 %v1757_v9  ;;  %849 = vmatpush.msra.mxu1 %v1788_v20 }
 0x16f   :  { %745 = vmatpush.msrb.mxu3 %v1849_v42 }
 0x170   :  { %830 = vmatpush.msra.mxu0 %v1767_v12  ;;  %850 = vmatpush.msra.mxu1 %v1798_v24 }
 0x171   :  { %746 = vmatpush.msrb.mxu3 %v1854_v43 }
 0x172   :  { %831 = vmatpush.msra.mxu0 %v1777_v15  ;;  %851 = vmatpush.msra.mxu1 %v2365_v18 }
 0x173   :  { %747 = vmatpush.msrb.mxu3 %v2366_v26 }
 0x174   :  { %832 = vmatpush.msra.mxu0 %v2367_v47  ;;  %852 = vmatpush.msra.mxu1 %v2368_v40 }
 0x175   :  { %748 = vmatpush.msrb.mxu3 %v2369_v48 }
 0x176   :  { %833 = vmatpush.msra.mxu0 %v2370_v53  ;;  %853 = vmatpush.msra.mxu1 %v2371_v61 }
 0x1d3   :  { %v479_v62 = vpop.f32.mrf.mxu0 }
 0x1d4   :  { %v526_v54 = vrot.slane %v479_v62, 6 }
 0x1d6   :  { %v528_v28 = vadd.f32 %v526_v54, %v440_v5  ;;  %v499_v54 = vpop.f32.mrf.mxu1 }
 0x1d8   :  { %v1325_v55 = vmul.f32 -1.442695, %v528_v28 }
 0x1d9   :  { %v459_v46 = vpop.f32.mrf.mxu3 }
 0x1da   :  { %1361 = vpow2.f32 %v1325_v55  ;;  %v503_v1 = vrot.slane %v459_v46, 6  ;;  %v548_v55 = vadd.f32 %v1981_v32, %v499_v54 }
 0x1dc   :  { %v505_v23 = vadd.f32 %v503_v1, %v439_v6 }
 0x1de   :  { %v1324_v2 = vmul.f32 -1.442695, %v505_v23 }
 0x1e0   :  { %v1362_v50 = vpop.eup %1361  ;;  %1363 = vpow2.f32 %v1324_v2 }
 0x1e1   :  { %v532_v51 = vadd.f32 1.0, %v1362_v50  ;;  %v550_v50 = vrot.slane %v548_v55, 6 }
 0x1e3   :  { %1365 = vrcp.f32 %v532_v51  ;;  %vm538_vm14 = vweird.f32 %v532_v51  ;;  %v542_v15 = vand.u32 2147483647, %v532_v51 }
 0x1e5   :  { %vm543_vm0 = vcmp.eq.f32.partialorder %v542_v15, 8.507059e+37 }
 0x1e6   :  { %v1364_v44 = vpop.eup %1363 }
 0x1e7   :  { %v509_v30 = vadd.f32 1.0, %v1364_v44 }
 0x1e9   :  { %1367 = vrcp.f32 %v509_v30  ;;  %v1366_v53 = vpop.eup %1365  ;;  %v521_v28 = vand.u32 2147483648, %v509_v30  ;;  %v519_v1 = vand.u32 2147483647, %v509_v30  ;;  %vm515_vm10 = vweird.f32 %v509_v30 }
 0x1ea   :  { %v534_v61 = vmul.f32 %v1366_v53, %v532_v51  ;;  %vm539_vm13 = vweird.f32 %v1366_v53 }
 0x1eb   :  { %v522_v2 = vor.u32 1.1754944e-38, %v521_v28  ;;  %vm520_vm12 = vcmp.eq.f32.partialorder %v519_v1, 8.507059e+37  ;;  %vm540_vm15 = vmor %vm538_vm14, %vm539_vm13  ;;  %v558_v28 = vrot.slane %v1984_v52, 6 }
 0x1ec   :  { %v535_v40 = vsub.f32 1.0, %v534_v61  ;;  %v544_v61 = vand.u32 2147483648, %v532_v51 }
 0x1ee   :  { %v536_v6 = vmul.f32 %v1366_v53, %v535_v40  ;;  %v545_v32 = vor.u32 1.1754944e-38, %v544_v61 }
 0x1ef   :  { %v1368_v48 = vpop.eup %1367 }
 0x1f0   :  { %v511_v62 = vmul.f32 %v1368_v48, %v509_v30  ;;  %vm516_vm9 = vweird.f32 %v1368_v48  ;;  %v537_v26 = vadd.f32 %v1366_v53, %v536_v6 }
 0x1f1   :  { %vm517_vm11 = vmor %vm515_vm10, %vm516_vm9 }
 0x1f2   :  { %v512_v5 = vsub.f32 1.0, %v511_v62  ;;  %v441_v62 = vld [vmem:[#allocation2 + $0x8] sm:$0xc] }
 0x1f4   :  { %v513_v46 = vmul.f32 %v1368_v48, %v512_v5  ;;  %v541_v5 = vsel %vm540_vm15, %v1366_v53, %v537_v26  ;;  %v2380_v26 = vld [vmem:[#allocation25_spill] sm:$0xff] }
 0x1f5   :  { %v546_v40 = vsel %vm543_vm0, %v545_v32, %v541_v5 }
 0x1f6   :  { %v514_v23 = vadd.f32 %v1368_v48, %v513_v46  ;;  %v555_v30 = vsub.f32 1.0, %v546_v40  ;;  %v560_v46 = vmul.f32 %v558_v28, %v546_v40 }
 0x1f8   :  { %v518_v44 = vsel %vm517_vm11, %v1368_v48, %v514_v23 }
 0x1f9   :  { %v523_v47 = vsel %vm520_vm12, %v522_v2, %v518_v44 }
 0x1fa   :  { %v552_v18 = vmul.f32 %v550_v50, %v523_v47 }
 0x1fc   :  { %v553_v54 = vadd.f32 %v552_v18, %v441_v62 }
 0x1fe   :  { %1369 = vtanh.f32 %v553_v54 }
 0x204   :  { %v1370_v48 = vpop.eup %1369 }
 0x205   :  { %v556_v55 = vmul.f32 %v1370_v48, %v555_v30  ;;  %v564_v30 = vld [vmem:[#allocation2 + $0x8] sm:$0x30] }
 0x207   :  { %v2039_v1 = vadd.f32 %v560_v46, %v556_v55 }
 0x209   :  { %v566_v47 = vrot.slane %v2039_v1, 2 }
 0x20b   :  { %584 = vmatmul.f32.vlgmr.msra.gmra.mxu2 %v566_v47  ;;  %604 = vmatmul.f32.vlgmr.msra.gmra.mxu3 %v566_v47 }
 0x20c   :  { %624 = vmatmul.f32.vlgmr.msrb.gmra.mxu0 %v566_v47  ;;  %858 = vmatpush.msra.mxu2 %v1761_v11 }
 0x20d   :  { %929 = vmatpush.msra.mxu3 %v1699_v19  ;;  %949 = vmatpush.msrb.mxu0 %v1724_v56  ;;  %v2372_v19 = vld [vmem:[#allocation17_spill] sm:$0xff] }
 0x20e   :  { %859 = vmatpush.msra.mxu2 %v1771_v14 }
 0x20f   :  { %930 = vmatpush.msra.mxu3 %v1701_v21  ;;  %950 = vmatpush.msrb.mxu0 %v1726_v57  ;;  %v2373_v21 = vld [vmem:[#allocation20_spill] sm:$0xff] }
 0x210   :  { %860 = vmatpush.msra.mxu2 %v1781_v17 }
 0x211   :  { %931 = vmatpush.msra.mxu3 %v1705_v29  ;;  %951 = vmatpush.msrb.mxu0 %v1729_v58  ;;  %v2374_v29 = vld [vmem:[#allocation23_spill] sm:$0xff] }
 0x212   :  { %861 = vmatpush.msra.mxu2 %v1790_v22 }
 0x213   :  { %932 = vmatpush.msra.mxu3 %v1708_v33  ;;  %952 = vmatpush.msrb.mxu0 %v1732_v59  ;;  %v2375_v33 = vld [vmem:[#allocation18_spill] sm:$0xff] }
 0x214   :  { %862 = vmatpush.msra.mxu2 %v1800_v25 }
 0x215   :  { %933 = vmatpush.msra.mxu3 %v1711_v37  ;;  %953 = vmatpush.msrb.mxu0 %v1735_v60  ;;  %v2376_v37 = vld [vmem:[#allocation21_spill] sm:$0xff]  ;;  %v562_v60 = vld [vmem:[#allocation2 + $0x28] sm:$0x30] }
 0x216   :  { %863 = vmatpush.msra.mxu2 %v1808_v27 }
 0x217   :  { %934 = vmatpush.msra.mxu3 %v1714_v41  ;;  %954 = vmatpush.msrb.mxu0 %v1741_v0  ;;  %v2377_v41 = vld [vmem:[#allocation24_spill] sm:$0xff] }
 0x218   :  { %864 = vmatpush.msra.mxu2 %v1815_v31 }
 0x219   :  { %935 = vmatpush.msra.mxu3 %v1717_v45  ;;  %955 = vmatpush.msrb.mxu0 %v1747_v4  ;;  %v2378_v45 = vld [vmem:[#allocation19_spill] sm:$0xff] }
 0x21a   :  { %865 = vmatpush.msra.mxu2 %v1823_v34 }
 0x21b   :  { %936 = vmatpush.msra.mxu3 %v1720_v49  ;;  %956 = vmatpush.msrb.mxu0 %v1753_v8  ;;  %v2379_v49 = vld [vmem:[#allocation22_spill] sm:$0xff] }
 0x21c   :  { %866 = vmatpush.msra.mxu2 %v1829_v35 }
 0x21d   :  { %937 = vmatpush.msra.mxu3 %v1739_v63  ;;  %957 = vmatpush.msrb.mxu0 %v1759_v10  ;;  %v563_v63 = vld [vmem:[#allocation2 + $0x10] sm:$0x30] }
 0x21e   :  { %867 = vmatpush.msra.mxu2 %v1834_v36 }
 0x21f   :  { %938 = vmatpush.msra.mxu3 %v1745_v3  ;;  %958 = vmatpush.msrb.mxu0 %v1769_v13 }
 0x220   :  { %868 = vmatpush.msra.mxu2 %v1839_v38 }
 0x221   :  { %939 = vmatpush.msra.mxu3 %v1751_v7  ;;  %959 = vmatpush.msrb.mxu0 %v1779_v16 }
 0x222   :  { %869 = vmatpush.msra.mxu2 %v1844_v39 }
 0x223   :  { %940 = vmatpush.msra.mxu3 %v1757_v9  ;;  %960 = vmatpush.msrb.mxu0 %v1788_v20 }
 0x224   :  { %870 = vmatpush.msra.mxu2 %v1849_v42 }
 0x225   :  { %941 = vmatpush.msra.mxu3 %v1767_v12  ;;  %961 = vmatpush.msrb.mxu0 %v1798_v24 }
 0x226   :  { %871 = vmatpush.msra.mxu2 %v1854_v43 }
 0x227   :  { %942 = vmatpush.msra.mxu3 %v2372_v19  ;;  %962 = vmatpush.msrb.mxu0 %v2373_v21  ;;  %v683_v19 = vrot.slane %v2039_v1, 6  ;;  %v2103_v1 = vld [vmem:[#allocation11 + $0x150] sm:$0xff] }
 0x228   :  { %872 = vmatpush.msra.mxu2 %v2374_v29 }
 0x229   :  { %943 = vmatpush.msra.mxu3 %v2375_v33  ;;  %963 = vmatpush.msrb.mxu0 %v2376_v37 }
 0x22a   :  { %873 = vmatpush.msra.mxu2 %v2377_v41 }
 0x22b   :  { %944 = vmatpush.msra.mxu3 %v2378_v45  ;;  %964 = vmatpush.msrb.mxu0 %v2379_v49 }
 0x289   :  { %v625_v20 = vpop.f32.mrf.mxu0 }
 0x28a   :  { %v674_v53 = vadd.f32 %v2380_v26, %v625_v20  ;;  %v2190_v20 = vld [vmem:[#allocation11 + $0x38] sm:$0xff] }
 0x28c   :  { %v676_v44 = vrot.slane %v674_v53, 4 }
 0x28e   :  { %v585_v56 = vpop.f32.mrf.mxu2  ;;  %v605_v57 = vpop.f32.mrf.mxu3 }
 0x28f   :  { %v629_v58 = vrot.slane %v585_v56, 4  ;;  %v652_v59 = vrot.slane %v605_v57, 4 }
 0x291   :  { %v631_v0 = vadd.f32 %v629_v58, %v562_v60  ;;  %v654_v3 = vadd.f32 %v652_v59, %v563_v63  ;;  %v2096_v59 = vld [vmem:[#allocation11 + $0x168] sm:$0xff]  ;;  %v2099_v60 = vld [vmem:[#allocation11 + $0x170] sm:$0xff]  ;;  %v2106_v63 = vld [vmem:[#allocation11 + $0x158] sm:$0xff] }
 0x293   :  { %v1326_v4 = vmul.f32 -1.442695, %v631_v0  ;;  %v1327_v7 = vmul.f32 -1.442695, %v654_v3  ;;  %v2113_v0 = vld [vmem:[#allocation11 + $0x140] sm:$0xff]  ;;  %v2120_v3 = vld [vmem:[#allocation11 + $0x128] sm:$0xff] }
 0x295   :  { %1371 = vpow2.f32 %v1326_v4  ;;  %v2127_v4 = vld [vmem:[#allocation11 + $0x110] sm:$0xff] }
 0x296   :  { %1373 = vpow2.f32 %v1327_v7  ;;  %v2134_v7 = vld [vmem:[#allocation11 + $0xf8] sm:$0xff] }
 0x29b   :  { %v1372_v8 = vpop.eup %1371 }
 0x29c   :  { %v1374_v9 = vpop.eup %1373  ;;  %v635_v10 = vadd.f32 1.0, %v1372_v8  ;;  %v2141_v8 = vld [vmem:[#allocation11 + $0xe0] sm:$0xff] }
 0x29d   :  { %v658_v12 = vadd.f32 1.0, %v1374_v9  ;;  %v2148_v9 = vld [vmem:[#allocation11 + $0xc8] sm:$0xff] }
 0x29e   :  { %1375 = vrcp.f32 %v635_v10  ;;  %v647_v52 = vand.u32 2147483648, %v635_v10  ;;  %v645_v6 = vand.u32 2147483647, %v635_v10  ;;  %vm641_vm2 = vweird.f32 %v635_v10 }
 0x29f   :  { %1377 = vrcp.f32 %v658_v12  ;;  %v670_v5 = vand.u32 2147483648, %v658_v12  ;;  %vm664_vm6 = vweird.f32 %v658_v12  ;;  %v668_v28 = vand.u32 2147483647, %v658_v12 }
 0x2a0   :  { %v648_v50 = vor.u32 1.1754944e-38, %v647_v52  ;;  %vm646_vm4 = vcmp.eq.f32.partialorder %v645_v6, 8.507059e+37  ;;  %v687_v52 = vld [vmem:[#allocation2 + $0x28] sm:$0xc0]  ;;  %v688_v6 = vld [vmem:[#allocation2 + $0x10] sm:$0xc0] }
 0x2a1   :  { %v671_v46 = vor.u32 1.1754944e-38, %v670_v5  ;;  %vm669_vm8 = vcmp.eq.f32.partialorder %v668_v28, 8.507059e+37 }
 0x2a4   :  { %v1376_v13 = vpop.eup %1375 }
 0x2a5   :  { %v1378_v15 = vpop.eup %1377  ;;  %v637_v16 = vmul.f32 %v1376_v13, %v635_v10  ;;  %vm642_vm1 = vweird.f32 %v1376_v13  ;;  %v2155_v10 = vld [vmem:[#allocation11 + $0xb0] sm:$0xff] }
 0x2a6   :  { %v660_v24 = vmul.f32 %v1378_v15, %v658_v12  ;;  %vm643_vm3 = vmor %vm641_vm2, %vm642_vm1  ;;  %vm665_vm5 = vweird.f32 %v1378_v15  ;;  %v2162_v12 = vld [vmem:[#allocation11 + $0x98] sm:$0xff] }
 0x2a7   :  { %v638_v32 = vsub.f32 1.0, %v637_v16  ;;  %vm666_vm7 = vmor %vm664_vm6, %vm665_vm5  ;;  %v2183_v16 = vld [vmem:[#allocation11 + $0x50] sm:$0xff] }
 0x2a8   :  { %v661_v18 = vsub.f32 1.0, %v660_v24  ;;  %v2199_v24 = vld [vmem:[#allocation11] sm:$0xff] }
 0x2a9   :  { %v639_v51 = vmul.f32 %v1376_v13, %v638_v32 }
 0x2aa   :  { %v662_v23 = vmul.f32 %v1378_v15, %v661_v18 }
 0x2ab   :  { %v640_v2 = vadd.f32 %v1376_v13, %v639_v51 }
 0x2ac   :  { %v663_v54 = vadd.f32 %v1378_v15, %v662_v23 }
 0x2ad   :  { %v644_v61 = vsel %vm643_vm3, %v1376_v13, %v640_v2  ;;  %v2169_v13 = vld [vmem:[#allocation11 + $0x80] sm:$0xff] }
 0x2ae   :  { %v649_v62 = vsel %vm646_vm4, %v648_v50, %v644_v61  ;;  %v667_v55 = vsel %vm666_vm7, %v1378_v15, %v663_v54  ;;  %v2176_v15 = vld [vmem:[#allocation11 + $0x68] sm:$0xff] }
 0x2af   :  { %v678_v40 = vmul.f32 %v676_v44, %v649_v62  ;;  %v672_v47 = vsel %vm669_vm8, %v671_v46, %v667_v55 }
 0x2b0   :  { %v681_v21 = vsub.f32 1.0, %v672_v47  ;;  %v685_v56 = vmul.f32 %v683_v19, %v672_v47 }
 0x2b1   :  { %v679_v48 = vadd.f32 %v678_v40, %v564_v30 }
 0x2b3   :  { %1379 = vtanh.f32 %v679_v48 }
 0x2b9   :  { %v1380_v33 = vpop.eup %1379 }
 0x2ba   :  { %v682_v45 = vmul.f32 %v1380_v33, %v681_v21 }
 0x2bc   :  { %v2092_v57 = vadd.f32 %v685_v56, %v682_v45 }
 0x2be   :  { %v691_v58 = vrot.slane %v2092_v57, 4 }
 0x2c0   :  { %709 = vmatmul.f32.vlgmr.msrb.gmra.mxu1 %v691_v58  ;;  %729 = vmatmul.f32.vlgmr.msrb.gmra.mxu2 %v691_v58 }
 0x2c1   :  { %749 = vmatmul.f32.vlgmr.msrb.gmra.mxu3 %v691_v58  ;;  %969 = vmatpush.msrb.mxu1 %v1761_v11  ;;  %v2110_v11 = vld [vmem:[#allocation11 + $0x138] sm:$0xff] }
 0x2c2   :  { %1055 = vmatpush.msrb.mxu2 %v2096_v59  ;;  %1075 = vmatpush.msrb.mxu3 %v2099_v60 }
 0x2c3   :  { %970 = vmatpush.msrb.mxu1 %v1771_v14  ;;  %v2117_v14 = vld [vmem:[#allocation11 + $0x120] sm:$0xff] }
 0x2c4   :  { %1056 = vmatpush.msrb.mxu2 %v2103_v1  ;;  %1076 = vmatpush.msrb.mxu3 %v2106_v63 }
 0x2c5   :  { %971 = vmatpush.msrb.mxu1 %v1781_v17  ;;  %v2124_v17 = vld [vmem:[#allocation11 + $0x108] sm:$0xff] }
 0x2c6   :  { %1057 = vmatpush.msrb.mxu2 %v2110_v11  ;;  %1077 = vmatpush.msrb.mxu3 %v2113_v0 }
 0x2c7   :  { %972 = vmatpush.msrb.mxu1 %v1790_v22  ;;  %v2131_v22 = vld [vmem:[#allocation11 + $0xf0] sm:$0xff] }
 0x2c8   :  { %1058 = vmatpush.msrb.mxu2 %v2117_v14  ;;  %1078 = vmatpush.msrb.mxu3 %v2120_v3 }
 0x2c9   :  { %973 = vmatpush.msrb.mxu1 %v1800_v25  ;;  %v2138_v25 = vld [vmem:[#allocation11 + $0xd8] sm:$0xff] }
 0x2ca   :  { %1059 = vmatpush.msrb.mxu2 %v2124_v17  ;;  %1079 = vmatpush.msrb.mxu3 %v2127_v4 }
 0x2cb   :  { %974 = vmatpush.msrb.mxu1 %v1808_v27  ;;  %v2145_v27 = vld [vmem:[#allocation11 + $0xc0] sm:$0xff] }
 0x2cc   :  { %1060 = vmatpush.msrb.mxu2 %v2131_v22  ;;  %1080 = vmatpush.msrb.mxu3 %v2134_v7 }
 0x2cd   :  { %975 = vmatpush.msrb.mxu1 %v1815_v31  ;;  %v2152_v31 = vld [vmem:[#allocation11 + $0xa8] sm:$0xff] }
 0x2ce   :  { %1061 = vmatpush.msrb.mxu2 %v2138_v25  ;;  %1081 = vmatpush.msrb.mxu3 %v2141_v8 }
 0x2cf   :  { %976 = vmatpush.msrb.mxu1 %v1823_v34  ;;  %v2159_v34 = vld [vmem:[#allocation11 + $0x90] sm:$0xff] }
 0x2d0   :  { %1062 = vmatpush.msrb.mxu2 %v2145_v27  ;;  %1082 = vmatpush.msrb.mxu3 %v2148_v9 }
 0x2d1   :  { %977 = vmatpush.msrb.mxu1 %v1829_v35  ;;  %v2166_v35 = vld [vmem:[#allocation11 + $0x78] sm:$0xff] }
 0x2d2   :  { %1063 = vmatpush.msrb.mxu2 %v2152_v31  ;;  %1083 = vmatpush.msrb.mxu3 %v2155_v10 }
 0x2d3   :  { %978 = vmatpush.msrb.mxu1 %v1834_v36  ;;  %v2173_v36 = vld [vmem:[#allocation11 + $0x60] sm:$0xff] }
 0x2d4   :  { %1064 = vmatpush.msrb.mxu2 %v2159_v34  ;;  %1084 = vmatpush.msrb.mxu3 %v2162_v12 }
 0x2d5   :  { %979 = vmatpush.msrb.mxu1 %v1839_v38  ;;  %v2180_v38 = vld [vmem:[#allocation11 + $0x48] sm:$0xff] }
 0x2d6   :  { %1065 = vmatpush.msrb.mxu2 %v2166_v35  ;;  %1085 = vmatpush.msrb.mxu3 %v2169_v13 }
 0x2d7   :  { %980 = vmatpush.msrb.mxu1 %v1844_v39  ;;  %v2187_v39 = vld [vmem:[#allocation11 + $0x30] sm:$0xff] }
 0x2d8   :  { %1066 = vmatpush.msrb.mxu2 %v2173_v36  ;;  %1086 = vmatpush.msrb.mxu3 %v2176_v15 }
 0x2d9   :  { %981 = vmatpush.msrb.mxu1 %v1849_v42  ;;  %v2194_v42 = vld [vmem:[#allocation11 + $0x18] sm:$0xff] }
 0x2da   :  { %1067 = vmatpush.msrb.mxu2 %v2180_v38  ;;  %1087 = vmatpush.msrb.mxu3 %v2183_v16 }
 0x2db   :  { %982 = vmatpush.msrb.mxu1 %v1854_v43 }
 0x2dc   :  { %1068 = vmatpush.msrb.mxu2 %v2187_v39  ;;  %1088 = vmatpush.msrb.mxu3 %v2190_v20 }
 0x2dd   :  { %983 = vmatpush.msrb.mxu1 %v2374_v29 }
 0x2de   :  { %1069 = vmatpush.msrb.mxu2 %v2194_v42  ;;  %1089 = vmatpush.msrb.mxu3 %v2376_v37 }
 0x2df   :  { %984 = vmatpush.msrb.mxu1 %v2377_v41 }
 0x2e0   :  { %1070 = vmatpush.msrb.mxu2 %v2199_v24  ;;  %1090 = vmatpush.msrb.mxu3 %v2379_v49 }
 0x33d   :  { %v710_v43 = vpop.f32.mrf.mxu1 }
 0x33e   :  { %v754_v32 = vrot.slane %v710_v43, 2 }
 0x340   :  { %v756_v18 = vadd.f32 %v754_v32, %v687_v52  ;;  %v689_v32 = vld [vmem:[#allocation2 + $0x8] sm:$0xc0] }
 0x342   :  { %v1328_v53 = vmul.f32 -1.442695, %v756_v18 }
 0x343   :  { %v730_v29 = vpop.f32.mrf.mxu2 }
 0x344   :  { %1381 = vpow2.f32 %v1328_v53  ;;  %v777_v51 = vrot.slane %v730_v29, 2  ;;  %v750_v62 = vpop.f32.mrf.mxu3 }
 0x345   :  { %v799_v28 = vadd.f32 %v2380_v26, %v750_v62  ;;  %v2220_v62 = vld [vmem:[#allocation11 + $0x148] sm:$0xff] }
 0x346   :  { %v779_v23 = vadd.f32 %v777_v51, %v688_v6 }
 0x347   :  { %v801_v33 = vrot.slane %v799_v28, 2 }
 0x348   :  { %v1329_v2 = vmul.f32 -1.442695, %v779_v23  ;;  %v808_v23 = vrot.slane %v2092_v57, 6  ;;  %v2215_v57 = vld [vmem:[#allocation11 + $0x160] sm:$0xff] }
 0x34a   :  { %v1382_v37 = vpop.eup %1381  ;;  %1383 = vpow2.f32 %v1329_v2 }
 0x34b   :  { %v760_v41 = vadd.f32 1.0, %v1382_v37 }
 0x34d   :  { %1385 = vrcp.f32 %v760_v41  ;;  %v772_v5 = vand.u32 2147483648, %v760_v41  ;;  %v770_v30 = vand.u32 2147483647, %v760_v41  ;;  %vm766_vm10 = vweird.f32 %v760_v41 }
 0x34f   :  { %v773_v47 = vor.u32 1.1754944e-38, %v772_v5  ;;  %vm771_vm12 = vcmp.eq.f32.partialorder %v770_v30, 8.507059e+37 }
 0x350   :  { %v1384_v50 = vpop.eup %1383 }
 0x351   :  { %v783_v44 = vadd.f32 1.0, %v1384_v50 }
 0x353   :  { %v1386_v61 = vpop.eup %1385  ;;  %1387 = vrcp.f32 %v783_v44  ;;  %v795_v43 = vand.u32 2147483648, %v783_v44  ;;  %v793_v52 = vand.u32 2147483647, %v783_v44  ;;  %vm789_vm14 = vweird.f32 %v783_v44 }
 0x354   :  { %v762_v49 = vmul.f32 %v1386_v61, %v760_v41  ;;  %vm767_vm9 = vweird.f32 %v1386_v61 }
 0x355   :  { %vm768_vm11 = vmor %vm766_vm10, %vm767_vm9  ;;  %v796_v51 = vor.u32 1.1754944e-38, %v795_v43  ;;  %vm794_vm0 = vcmp.eq.f32.partialorder %v793_v52, 8.507059e+37 }
 0x356   :  { %v763_v54 = vsub.f32 1.0, %v762_v49 }
 0x358   :  { %v764_v40 = vmul.f32 %v1386_v61, %v763_v54  ;;  %v2225_v54 = vld [vmem:[#allocation11 + $0x130] sm:$0xff] }
 0x359   :  { %v1388_v48 = vpop.eup %1387 }
 0x35a   :  { %v785_v55 = vmul.f32 %v1388_v48, %v783_v44  ;;  %v765_v46 = vadd.f32 %v1386_v61, %v764_v40  ;;  %vm790_vm13 = vweird.f32 %v1388_v48  ;;  %v2210_v44 = vld [vmem:[#allocation11 + $0x178] sm:$0xff] }
 0x35b   :  { %vm791_vm15 = vmor %vm789_vm14, %vm790_vm13 }
 0x35c   :  { %v786_v19 = vsub.f32 1.0, %v785_v55  ;;  %v769_v21 = vsel %vm768_vm11, %v1386_v61, %v765_v46 }
 0x35d   :  { %v774_v45 = vsel %vm771_vm12, %v773_v47, %v769_v21 }
 0x35e   :  { %v803_v56 = vmul.f32 %v801_v33, %v774_v45  ;;  %v787_v58 = vmul.f32 %v1388_v48, %v786_v19 }
 0x360   :  { %v804_v18 = vadd.f32 %v803_v56, %v689_v32  ;;  %v788_v53 = vadd.f32 %v1388_v48, %v787_v58  ;;  %v814_v32 = vld [vmem:[#allocation2 + $0x20] sm:$0x3] }
 0x362   :  { %1389 = vtanh.f32 %v804_v18  ;;  %v792_v29 = vsel %vm791_vm15, %v1388_v48, %v788_v53 }
 0x363   :  { %v797_v6 = vsel %vm794_vm0, %v796_v51, %v792_v29 }
 0x364   :  { %v806_v2 = vsub.f32 1.0, %v797_v6  ;;  %v810_v50 = vmul.f32 %v808_v23, %v797_v6 }
 0x368   :  { %v1390_v37 = vpop.eup %1389 }
 0x369   :  { %v807_v41 = vmul.f32 %v1390_v37, %v806_v2 }
 0x36b   :  { %v811_v61 = vadd.f32 %v810_v50, %v807_v41 }
 0x36d   :  { %v2205_v49 = vrot.slane %v811_v61, 6  ;;  %v927_v61 = vld [vmem:[#allocation2 + $0x18] sm:$0xc] }
 0x36f   :  { %834 = vmatmul.f32.vlgmr.msra.gmra.mxu0 %v2205_v49  ;;  %854 = vmatmul.f32.vlgmr.msra.gmra.mxu1 %v2205_v49 }
 0x370   :  { %874 = vmatmul.f32.vlgmr.msra.gmra.mxu2 %v2205_v49  ;;  %1095 = vmatpush.msra.mxu0 %v2210_v44 }
 0x371   :  { %1180 = vmatpush.msra.mxu1 %v2096_v59  ;;  %1200 = vmatpush.msra.mxu2 %v2099_v60  ;;  %v2230_v59 = vld [vmem:[#allocation11 + $0x118] sm:$0xff]  ;;  %v2235_v60 = vld [vmem:[#allocation11 + $0x100] sm:$0xff] }
 0x372   :  { %1096 = vmatpush.msra.mxu0 %v2215_v57 }
 0x373   :  { %1181 = vmatpush.msra.mxu1 %v2103_v1  ;;  %1201 = vmatpush.msra.mxu2 %v2106_v63  ;;  %v2240_v1 = vld [vmem:[#allocation11 + $0xe8] sm:$0xff]  ;;  %v2245_v63 = vld [vmem:[#allocation11 + $0xd0] sm:$0xff] }
 0x374   :  { %1097 = vmatpush.msra.mxu0 %v2220_v62 }
 0x375   :  { %1182 = vmatpush.msra.mxu1 %v2110_v11  ;;  %1202 = vmatpush.msra.mxu2 %v2113_v0  ;;  %v2250_v11 = vld [vmem:[#allocation11 + $0xb8] sm:$0xff]  ;;  %v2255_v0 = vld [vmem:[#allocation11 + $0xa0] sm:$0xff] }
 0x376   :  { %1098 = vmatpush.msra.mxu0 %v2225_v54 }
 0x377   :  { %1183 = vmatpush.msra.mxu1 %v2117_v14  ;;  %1203 = vmatpush.msra.mxu2 %v2120_v3  ;;  %v2260_v14 = vld [vmem:[#allocation11 + $0x88] sm:$0xff]  ;;  %v2265_v3 = vld [vmem:[#allocation11 + $0x70] sm:$0xff] }
 0x378   :  { %1099 = vmatpush.msra.mxu0 %v2230_v59 }
 0x379   :  { %1184 = vmatpush.msra.mxu1 %v2124_v17  ;;  %1204 = vmatpush.msra.mxu2 %v2127_v4  ;;  %v2270_v17 = vld [vmem:[#allocation11 + $0x58] sm:$0xff]  ;;  %v2275_v4 = vld [vmem:[#allocation11 + $0x40] sm:$0xff] }
 0x37a   :  { %1100 = vmatpush.msra.mxu0 %v2235_v60 }
 0x37b   :  { %1185 = vmatpush.msra.mxu1 %v2131_v22  ;;  %1205 = vmatpush.msra.mxu2 %v2134_v7  ;;  %v2280_v22 = vld [vmem:[#allocation11 + $0x28] sm:$0xff]  ;;  %v1476_v7 = vld [vmem:[#allocation11 + $0x20] sm:$0xff] }
 0x37c   :  { %1101 = vmatpush.msra.mxu0 %v2240_v1 }
 0x37d   :  { %1186 = vmatpush.msra.mxu1 %v2138_v25  ;;  %1206 = vmatpush.msra.mxu2 %v2141_v8  ;;  %v2284_v25 = vld [vmem:[#allocation11 + $0x10] sm:$0xff]  ;;  %v1478_v8 = vld [vmem:[#allocation11 + $0x8] sm:$0xff] }
 0x37e   :  { %1102 = vmatpush.msra.mxu0 %v2245_v63 }
 0x37f   :  { %1187 = vmatpush.msra.mxu1 %v2145_v27  ;;  %1207 = vmatpush.msra.mxu2 %v2148_v9  ;;  %v812_v27 = vld [vmem:[#allocation2] sm:$0x3] }
 0x380   :  { %1103 = vmatpush.msra.mxu0 %v2250_v11 }
 0x381   :  { %1188 = vmatpush.msra.mxu1 %v2152_v31  ;;  %1208 = vmatpush.msra.mxu2 %v2155_v10  ;;  %v813_v31 = vld [vmem:[#allocation2 + $0x18] sm:$0x3] }
 0x382   :  { %1104 = vmatpush.msra.mxu0 %v2255_v0 }
 0x383   :  { %1189 = vmatpush.msra.mxu1 %v2159_v34  ;;  %1209 = vmatpush.msra.mxu2 %v2162_v12 }
 0x384   :  { %1105 = vmatpush.msra.mxu0 %v2260_v14 }
 0x385   :  { %1190 = vmatpush.msra.mxu1 %v2166_v35  ;;  %1210 = vmatpush.msra.mxu2 %v2169_v13 }
 0x386   :  { %1106 = vmatpush.msra.mxu0 %v2265_v3 }
 0x387   :  { %1191 = vmatpush.msra.mxu1 %v2173_v36  ;;  %1211 = vmatpush.msra.mxu2 %v2176_v15 }
 0x388   :  { %1107 = vmatpush.msra.mxu0 %v2270_v17 }
 0x389   :  { %1192 = vmatpush.msra.mxu1 %v2180_v38  ;;  %1212 = vmatpush.msra.mxu2 %v2183_v16 }
 0x38a   :  { %1108 = vmatpush.msra.mxu0 %v2275_v4 }
 0x38b   :  { %1193 = vmatpush.msra.mxu1 %v2187_v39  ;;  %1213 = vmatpush.msra.mxu2 %v2190_v20 }
 0x38c   :  { %1109 = vmatpush.msra.mxu0 %v2280_v22 }
 0x38d   :  { %1194 = vmatpush.msra.mxu1 %v2194_v42  ;;  %1214 = vmatpush.msra.mxu2 %v1476_v7 }
 0x38e   :  { %1110 = vmatpush.msra.mxu0 %v2284_v25 }
 0x38f   :  { %1195 = vmatpush.msra.mxu1 %v2199_v24  ;;  %1215 = vmatpush.msra.mxu2 %v1478_v8 }
 0x3ec   :  { %v835_v9 = vpop.f32.mrf.mxu0  ;;  %v855_v10 = vpop.f32.mrf.mxu1 }
 0x3ed   :  { %v878_v34 = vadd.f32 %v835_v9, %v812_v27  ;;  %v898_v12 = vadd.f32 %v855_v10, %v813_v31  ;;  %v2314_v27 = vld [vmem:[%s2337_s6] ss:$0 sm:$0xff]  ;;  %s1642_s6 = smov [#allocation12]  }
 0x3ee   :  { %s1306_s30 = sshll.u32 %s1642_s6, 4  ;;  %s1307_s30 = int_to_ptr.vmem [resolvable:$true] %s1306_s30 }
 0x3ef   :  { %v1330_v35 = vmul.f32 -1.442695, %v878_v34  ;;  %v1331_v13 = vmul.f32 -1.442695, %v898_v12 }
 0x3f1   :  { %1391 = vpow2.f32 %v1330_v35 }
 0x3f2   :  { %1393 = vpow2.f32 %v1331_v13 }
 0x3f3   :  { %v875_v46 = vpop.f32.mrf.mxu2 }
 0x3f4   :  { %v918_v33 = vadd.f32 %v2380_v26, %v875_v46 }
 0x3f7   :  { %v1392_v36 = vpop.eup %1391 }
 0x3f8   :  { %v1394_v15 = vpop.eup %1393  ;;  %v882_v38 = vadd.f32 1.0, %v1392_v36 }
 0x3f9   :  { %v902_v16 = vadd.f32 1.0, %v1394_v15 }
 0x3fa   :  { %1395 = vrcp.f32 %v882_v38  ;;  %v894_v30 = vand.u32 2147483648, %v882_v38  ;;  %v892_v48 = vand.u32 2147483647, %v882_v38  ;;  %vm888_vm2 = vweird.f32 %v882_v38 }
 0x3fb   :  { %1397 = vrcp.f32 %v902_v16  ;;  %v914_v43 = vand.u32 2147483648, %v902_v16  ;;  %vm908_vm6 = vweird.f32 %v902_v16  ;;  %v912_v52 = vand.u32 2147483647, %v902_v16 }
 0x3fc   :  { %v895_v19 = vor.u32 1.1754944e-38, %v894_v30  ;;  %vm893_vm4 = vcmp.eq.f32.partialorder %v892_v48, 8.507059e+37 }
 0x3fd   :  { %v915_v29 = vor.u32 1.1754944e-38, %v914_v43  ;;  %vm913_vm8 = vcmp.eq.f32.partialorder %v912_v52, 8.507059e+37  ;;  %v1049_v43 = vld [vmem:[#allocation2] sm:$0x30] }
 0x400   :  { %v1396_v39 = vpop.eup %1395 }
 0x401   :  { %v1398_v20 = vpop.eup %1397  ;;  %v884_v42 = vmul.f32 %v1396_v39, %v882_v38  ;;  %vm889_vm1 = vweird.f32 %v1396_v39 }
 0x402   :  { %v904_v24 = vmul.f32 %v1398_v20, %v902_v16  ;;  %vm890_vm3 = vmor %vm888_vm2, %vm889_vm1  ;;  %vm909_vm5 = vweird.f32 %v1398_v20 }
 0x403   :  { %v885_v5 = vsub.f32 1.0, %v884_v42  ;;  %vm910_vm7 = vmor %vm908_vm6, %vm909_vm5 }
 0x404   :  { %v905_v40 = vsub.f32 1.0, %v904_v24 }
 0x405   :  { %v886_v28 = vmul.f32 %v1396_v39, %v885_v5 }
 0x406   :  { %v906_v55 = vmul.f32 %v1398_v20, %v905_v40 }
 0x407   :  { %v887_v47 = vadd.f32 %v1396_v39, %v886_v28 }
 0x408   :  { %v907_v56 = vadd.f32 %v1398_v20, %v906_v55 }
 0x409   :  { %v891_v21 = vsel %vm890_vm3, %v1396_v39, %v887_v47 }
 0x40a   :  { %v896_v45 = vsel %vm893_vm4, %v895_v19, %v891_v21  ;;  %v911_v53 = vsel %vm910_vm7, %v1398_v20, %v907_v56  ;;  %v928_v20 = vld [vmem:[#allocation2 + $0x20] sm:$0xc] }
 0x40b   :  { %v919_v58 = vmul.f32 %v918_v33, %v896_v45  ;;  %v916_v51 = vsel %vm913_vm8, %v915_v29, %v911_v53 }
 0x40c   :  { %v922_v6 = vsub.f32 1.0, %v916_v51  ;;  %v924_v26 = vmul.f32 %v916_v51, %v2205_v49 }
 0x40d   :  { %v920_v18 = vadd.f32 %v919_v58, %v814_v32  ;;  %v1050_v32 = vld [vmem:[#allocation2 + $0x18] sm:$0x30] }
 0x40f   :  { %1399 = vtanh.f32 %v920_v18 }
 0x415   :  { %v1400_v23 = vpop.eup %1399 }
 0x416   :  { %v923_v2 = vmul.f32 %v1400_v23, %v922_v6 }
 0x418   :  { %v2290_v37 = vadd.f32 %v924_v26, %v923_v2 }
 0x41a   :  { %945 = vmatmul.f32.vlgmr.msra.gmra.mxu3 %v2290_v37  ;;  %965 = vmatmul.f32.vlgmr.msrb.gmra.mxu0 %v2290_v37  ;;  %v1045_v48 = vrot.slane %v2290_v37, 6 }
 0x41b   :  { %985 = vmatmul.f32.vlgmr.msrb.gmra.mxu1 %v2290_v37  ;;  %1220 = vmatpush.msra.mxu3 %v2210_v44 }
 0x41d   :  { %1221 = vmatpush.msra.mxu3 %v2215_v57 }
 0x41f   :  { %1222 = vmatpush.msra.mxu3 %v2220_v62 }
 0x421   :  { %1223 = vmatpush.msra.mxu3 %v2225_v54  ;;  %v926_v54 = vld [vmem:[#allocation2] sm:$0xc] }
 0x423   :  { %1224 = vmatpush.msra.mxu3 %v2230_v59 }
 0x425   :  { %1225 = vmatpush.msra.mxu3 %v2235_v60 }
 0x427   :  { %1226 = vmatpush.msra.mxu3 %v2240_v1 }
 0x429   :  { %1227 = vmatpush.msra.mxu3 %v2245_v63 }
 0x42b   :  { %1228 = vmatpush.msra.mxu3 %v2250_v11 }
 0x42d   :  { %1229 = vmatpush.msra.mxu3 %v2255_v0 }
 0x42f   :  { %1230 = vmatpush.msra.mxu3 %v2260_v14 }
 0x431   :  { %1231 = vmatpush.msra.mxu3 %v2265_v3 }
 0x433   :  { %1232 = vmatpush.msra.mxu3 %v2270_v17 }
 0x435   :  { %1233 = vmatpush.msra.mxu3 %v2275_v4 }
 0x437   :  { %1234 = vmatpush.msra.mxu3 %v2280_v22 }
 0x439   :  { %1235 = vmatpush.msra.mxu3 %v2284_v25 }
 0x497   :  { %v966_v41 = vpop.f32.mrf.mxu0 }
 0x498   :  { %v1013_v50 = vrot.slane %v966_v41, 6  ;;  %v986_v7 = vpop.f32.mrf.mxu1 }
 0x499   :  { %v1035_v9 = vadd.f32 %v2314_v27, %v986_v7 }
 0x49a   :  { %v1015_v49 = vadd.f32 %v1013_v50, %v927_v61 }
 0x49b   :  { %v1037_v13 = vrot.slane %v1035_v9, 6 }
 0x49c   :  { %v1333_v44 = vmul.f32 -1.442695, %v1015_v49 }
 0x49d   :  { %v946_v57 = vpop.f32.mrf.mxu3 }
 0x49e   :  { %1401 = vpow2.f32 %v1333_v44  ;;  %v990_v62 = vrot.slane %v946_v57, 6 }
 0x4a0   :  { %v992_v59 = vadd.f32 %v990_v62, %v926_v54 }
 0x4a2   :  { %v1332_v60 = vmul.f32 -1.442695, %v992_v59 }
 0x4a4   :  { %v1402_v1 = vpop.eup %1401  ;;  %1403 = vpow2.f32 %v1332_v60 }
 0x4a5   :  { %v1019_v63 = vadd.f32 1.0, %v1402_v1 }
 0x4a7   :  { %1405 = vrcp.f32 %v1019_v63  ;;  %v1031_v16 = vand.u32 2147483648, %v1019_v63  ;;  %vm1025_vm14 = vweird.f32 %v1019_v63  ;;  %v1029_v42 = vand.u32 2147483647, %v1019_v63 }
 0x4a9   :  { %v1032_v40 = vor.u32 1.1754944e-38, %v1031_v16  ;;  %vm1030_vm0 = vcmp.eq.f32.partialorder %v1029_v42, 8.507059e+37 }
 0x4aa   :  { %v1404_v11 = vpop.eup %1403 }
 0x4ab   :  { %v996_v0 = vadd.f32 1.0, %v1404_v11 }
 0x4ad   :  { %1407 = vrcp.f32 %v996_v0  ;;  %v1406_v14 = vpop.eup %1405  ;;  %v1008_v8 = vand.u32 2147483648, %v996_v0  ;;  %v1006_v10 = vand.u32 2147483647, %v996_v0  ;;  %vm1002_vm10 = vweird.f32 %v996_v0 }
 0x4ae   :  { %v1021_v3 = vmul.f32 %v1406_v14, %v1019_v63  ;;  %vm1026_vm13 = vweird.f32 %v1406_v14 }
 0x4af   :  { %v1009_v35 = vor.u32 1.1754944e-38, %v1008_v8  ;;  %vm1007_vm12 = vcmp.eq.f32.partialorder %v1006_v10, 8.507059e+37  ;;  %vm1027_vm15 = vmor %vm1025_vm14, %vm1026_vm13 }
 0x4b0   :  { %v1022_v22 = vsub.f32 1.0, %v1021_v3 }
 0x4b2   :  { %v1023_v34 = vmul.f32 %v1406_v14, %v1022_v22  ;;  %v1051_v22 = vld [vmem:[#allocation2 + $0x20] sm:$0x30] }
 0x4b3   :  { %v1408_v17 = vpop.eup %1407 }
 0x4b4   :  { %v998_v4 = vmul.f32 %v1408_v17, %v996_v0  ;;  %vm1003_vm9 = vweird.f32 %v1408_v17  ;;  %v1024_v38 = vadd.f32 %v1406_v14, %v1023_v34 }
 0x4b5   :  { %vm1004_vm11 = vmor %vm1002_vm10, %vm1003_vm9 }
 0x4b6   :  { %v999_v25 = vsub.f32 1.0, %v998_v4  ;;  %v1028_v5 = vsel %vm1027_vm15, %v1406_v14, %v1024_v38 }
 0x4b7   :  { %v1033_v30 = vsel %vm1030_vm0, %v1032_v40, %v1028_v5  ;;  %v1175_v40 = vld [vmem:[#allocation2 + $0x18] sm:$0xc0] }
 0x4b8   :  { %v1000_v31 = vmul.f32 %v1408_v17, %v999_v25  ;;  %v1042_v28 = vsub.f32 1.0, %v1033_v30  ;;  %v1047_v47 = vmul.f32 %v1045_v48, %v1033_v30 }
 0x4ba   :  { %v1001_v12 = vadd.f32 %v1408_v17, %v1000_v31 }
 0x4bc   :  { %v1005_v36 = vsel %vm1004_vm11, %v1408_v17, %v1001_v12 }
 0x4bd   :  { %v1010_v15 = vsel %vm1007_vm12, %v1009_v35, %v1005_v36 }
 0x4be   :  { %v1039_v39 = vmul.f32 %v1037_v13, %v1010_v15 }
 0x4c0   :  { %v1040_v24 = vadd.f32 %v1039_v39, %v928_v20  ;;  %v1174_v39 = vld [vmem:[#allocation2] sm:$0xc0] }
 0x4c2   :  { %1409 = vtanh.f32 %v1040_v24 }
 0x4c8   :  { %v1410_v55 = vpop.eup %1409 }
 0x4c9   :  { %v1043_v46 = vmul.f32 %v1410_v55, %v1042_v28 }
 0x4cb   :  { %v2318_v19 = vadd.f32 %v1047_v47, %v1043_v46 }
 0x4cd   :  { %v1053_v21 = vrot.slane %v2318_v19, 2  ;;  %v1170_v10 = vrot.slane %v2318_v19, 6 }
 0x4cf   :  { %1071 = vmatmul.f32.vlgmr.msrb.gmra.mxu2 %v1053_v21  ;;  %1091 = vmatmul.f32.vlgmr.msrb.gmra.mxu3 %v1053_v21 }
 0x4d0   :  { %1111 = vmatmul.f32.vlgmr.msra.gmra.mxu0 %v1053_v21 }
 0x54d   :  { %v1112_v50 = vpop.f32.mrf.mxu0 }
 0x54e   :  { %v1161_v62 = vadd.f32 %v2314_v27, %v1112_v50  ;;  %v1176_v50 = vld [vmem:[#allocation2 + $0x20] sm:$0xc0] }
 0x550   :  { %v1163_v11 = vrot.slane %v1161_v62, 4 }
 0x552   :  { %v1072_v33 = vpop.f32.mrf.mxu2  ;;  %v1092_v45 = vpop.f32.mrf.mxu3 }
 0x553   :  { %v1116_v56 = vrot.slane %v1072_v33, 4  ;;  %v1139_v58 = vrot.slane %v1092_v45, 4 }
 0x555   :  { %v1118_v52 = vadd.f32 %v1116_v56, %v1049_v43  ;;  %v1141_v18 = vadd.f32 %v1139_v58, %v1050_v32 }
 0x557   :  { %v1334_v53 = vmul.f32 -1.442695, %v1118_v52  ;;  %v1335_v29 = vmul.f32 -1.442695, %v1141_v18 }
 0x559   :  { %1411 = vpow2.f32 %v1334_v53 }
 0x55a   :  { %1413 = vpow2.f32 %v1335_v29 }
 0x55f   :  { %v1412_v51 = vpop.eup %1411 }
 0x560   :  { %v1414_v6 = vpop.eup %1413  ;;  %v1122_v23 = vadd.f32 1.0, %v1412_v51 }
 0x561   :  { %v1145_v2 = vadd.f32 1.0, %v1414_v6 }
 0x562   :  { %1415 = vrcp.f32 %v1122_v23  ;;  %v1134_v44 = vand.u32 2147483648, %v1122_v23  ;;  %v1132_v59 = vand.u32 2147483647, %v1122_v23  ;;  %vm1128_vm2 = vweird.f32 %v1122_v23 }
 0x563   :  { %1417 = vrcp.f32 %v1145_v2  ;;  %v1157_v17 = vand.u32 2147483648, %v1145_v2  ;;  %vm1151_vm6 = vweird.f32 %v1145_v2  ;;  %v1155_v7 = vand.u32 2147483647, %v1145_v2 }
 0x564   :  { %v1135_v63 = vor.u32 1.1754944e-38, %v1134_v44  ;;  %vm1133_vm4 = vcmp.eq.f32.partialorder %v1132_v59, 8.507059e+37 }
 0x565   :  { %v1158_v9 = vor.u32 1.1754944e-38, %v1157_v17  ;;  %vm1156_vm8 = vcmp.eq.f32.partialorder %v1155_v7, 8.507059e+37 }
 0x568   :  { %v1416_v26 = vpop.eup %1415 }
 0x569   :  { %v1418_v37 = vpop.eup %1417  ;;  %v1124_v41 = vmul.f32 %v1416_v26, %v1122_v23  ;;  %vm1129_vm1 = vweird.f32 %v1416_v26 }
 0x56a   :  { %v1147_v61 = vmul.f32 %v1418_v37, %v1145_v2  ;;  %vm1130_vm3 = vmor %vm1128_vm2, %vm1129_vm1  ;;  %vm1152_vm5 = vweird.f32 %v1418_v37  ;;  %vm1299_vm1 = vcmask 261126  }
 0x56b   :  { %v1125_v49 = vsub.f32 1.0, %v1124_v41  ;;  %vm1153_vm7 = vmor %vm1151_vm6, %vm1152_vm5 }
 0x56c   :  { %v1148_v57 = vsub.f32 1.0, %v1147_v61 }
 0x56d   :  { %v1126_v54 = vmul.f32 %v1416_v26, %v1125_v49 }
 0x56e   :  { %v1149_v60 = vmul.f32 %v1418_v37, %v1148_v57 }
 0x56f   :  { %v1127_v1 = vadd.f32 %v1416_v26, %v1126_v54 }
 0x570   :  { %v1150_v3 = vadd.f32 %v1418_v37, %v1149_v60 }
 0x571   :  { %v1131_v0 = vsel %vm1130_vm3, %v1416_v26, %v1127_v1 }
 0x572   :  { %v1136_v14 = vsel %vm1133_vm4, %v1135_v63, %v1131_v0  ;;  %v1154_v8 = vsel %vm1153_vm7, %v1418_v37, %v1150_v3 }
 0x573   :  { %v1165_v4 = vmul.f32 %v1163_v11, %v1136_v14  ;;  %v1159_v31 = vsel %vm1156_vm8, %v1158_v9, %v1154_v8 }
 0x574   :  { %v1168_v34 = vsub.f32 1.0, %v1159_v31  ;;  %v1172_v13 = vmul.f32 %v1170_v10, %v1159_v31 }
 0x575   :  { %v1166_v25 = vadd.f32 %v1165_v4, %v1051_v22 }
 0x577   :  { %1419 = vtanh.f32 %v1166_v25 }
 0x57d   :  { %v1420_v12 = vpop.eup %1419 }
 0x57e   :  { %v1169_v35 = vmul.f32 %v1420_v12, %v1168_v34 }
 0x580   :  { %v2323_v36 = vadd.f32 %v1172_v13, %v1169_v35 }
 0x582   :  { %v1178_v15 = vrot.slane %v2323_v36, 4  ;;  %v1295_v54 = vrot.slane %v2323_v36, 6 }
 0x584   :  { %1196 = vmatmul.f32.vlgmr.msra.gmra.mxu1 %v1178_v15  ;;  %1216 = vmatmul.f32.vlgmr.msra.gmra.mxu2 %v1178_v15 }
 0x585   :  { %1236 = vmatmul.f32.vlgmr.msra.gmra.mxu3 %v1178_v15 }
 0x601   :  { %v1197_v38 = vpop.f32.mrf.mxu1 }
 0x602   :  { %v1241_v16 = vrot.slane %v1197_v38, 2 }
 0x604   :  { %v1243_v20 = vadd.f32 %v1241_v16, %v1174_v39 }
 0x606   :  { %v1336_v42 = vmul.f32 -1.442695, %v1243_v20 }
 0x607   :  { %v1217_v24 = vpop.f32.mrf.mxu2 }
 0x608   :  { %1421 = vpow2.f32 %v1336_v42  ;;  %v1264_v5 = vrot.slane %v1217_v24, 2  ;;  %v1237_v33 = vpop.f32.mrf.mxu3 }
 0x609   :  { %v1286_v32 = vadd.f32 %v2314_v27, %v1237_v33 }
 0x60a   :  { %v1266_v30 = vadd.f32 %v1264_v5, %v1175_v40 }
 0x60b   :  { %v1288_v23 = vrot.slane %v1286_v32, 2 }
 0x60c   :  { %v1337_v28 = vmul.f32 -1.442695, %v1266_v30 }
 0x60e   :  { %v1422_v48 = vpop.eup %1421  ;;  %1423 = vpow2.f32 %v1337_v28 }
 0x60f   :  { %v1247_v55 = vadd.f32 1.0, %v1422_v48 }
 0x611   :  { %1425 = vrcp.f32 %v1247_v55  ;;  %v1259_v56 = vand.u32 2147483648, %v1247_v55  ;;  %v1257_v43 = vand.u32 2147483647, %v1247_v55  ;;  %vm1253_vm10 = vweird.f32 %v1247_v55 }
 0x613   :  { %v1260_v29 = vor.u32 1.1754944e-38, %v1259_v56  ;;  %vm1258_vm12 = vcmp.eq.f32.partialorder %v1257_v43, 8.507059e+37 }
 0x614   :  { %v1424_v46 = vpop.eup %1423 }
 0x615   :  { %v1270_v47 = vadd.f32 1.0, %v1424_v46 }
 0x617   :  { %v1426_v19 = vpop.eup %1425  ;;  %1427 = vrcp.f32 %v1270_v47  ;;  %v1282_v41 = vand.u32 2147483648, %v1270_v47  ;;  %v1280_v61 = vand.u32 2147483647, %v1270_v47  ;;  %vm1276_vm14 = vweird.f32 %v1270_v47 }
 0x618   :  { %v1249_v21 = vmul.f32 %v1426_v19, %v1247_v55  ;;  %vm1254_vm9 = vweird.f32 %v1426_v19 }
 0x619   :  { %vm1255_vm11 = vmor %vm1253_vm10, %vm1254_vm9  ;;  %v1283_v57 = vor.u32 1.1754944e-38, %v1282_v41  ;;  %vm1281_vm0 = vcmp.eq.f32.partialorder %v1280_v61, 8.507059e+37 }
 0x61a   :  { %v1250_v45 = vsub.f32 1.0, %v1249_v21 }
 0x61c   :  { %v1251_v58 = vmul.f32 %v1426_v19, %v1250_v45 }
 0x61d   :  { %v1428_v52 = vpop.eup %1427 }
 0x61e   :  { %v1272_v18 = vmul.f32 %v1428_v52, %v1270_v47  ;;  %v1252_v53 = vadd.f32 %v1426_v19, %v1251_v58  ;;  %vm1277_vm13 = vweird.f32 %v1428_v52 }
 0x61f   :  { %vm1278_vm15 = vmor %vm1276_vm14, %vm1277_vm13 }
 0x620   :  { %v1273_v51 = vsub.f32 1.0, %v1272_v18  ;;  %v1256_v6 = vsel %vm1255_vm11, %v1426_v19, %v1252_v53 }
 0x621   :  { %v1261_v2 = vsel %vm1258_vm12, %v1260_v29, %v1256_v6 }
 0x622   :  { %v1274_v26 = vmul.f32 %v1428_v52, %v1273_v51  ;;  %v1290_v37 = vmul.f32 %v1288_v23, %v1261_v2 }
 0x624   :  { %v1291_v49 = vadd.f32 %v1290_v37, %v1176_v50  ;;  %v1275_v44 = vadd.f32 %v1428_v52, %v1274_v26 }
 0x626   :  { %1429 = vtanh.f32 %v1291_v49  ;;  %v1279_v27 = vsel %vm1278_vm15, %v1428_v52, %v1275_v44 }
 0x627   :  { %v1284_v62 = vsel %vm1281_vm0, %v1283_v57, %v1279_v27 }
 0x628   :  { %v1293_v59 = vsub.f32 1.0, %v1284_v62  ;;  %v1297_v63 = vmul.f32 %v1295_v54, %v1284_v62 }
 0x62c   :  { %v1430_v60 = vpop.eup %1429 }
 0x62d   :  { %v1294_v1 = vmul.f32 %v1430_v60, %v1293_v59 }
 0x62f   :  { %v1298_v11 = vadd.f32 %v1297_v63, %v1294_v1 }
 0x631   :  { %1300 = vst.msk [vmem:[#allocation12 - $0x6] sm:$0xc0] %vm1299_vm1, %v1298_v11 }
 0x632   :  { %1311 = dma.vmem_to_hbm [thread:$0]  %s1307_s30, 32, %s1309_s10, [#allocation5]  }
 0x633   :  { %1630 = dma.done.wait [#allocation5], 32  }
 0x634   :  { %1631 = vsyncadd [#allocation5], 4294967264 }
 0x635   :  { %1316 = vsyncpa [#allocation4], 1 }
 0x636   :  { %1317 = vsyncpa [#allocation7], 1 }
 0x637   :  { %1318 = vsyncpa [#allocation10], 1 }
 0x638   :  { %1319 = vsyncpa [#allocation5], 1 }

</bundles_post_ra>
